<compile_context>
chip_gen: v5e
topology: v5e:2x2
jax: 0.10.0
libtpu: 0.0.40
codegen_flags: <defaults>
</compile_context>

<pallas_src>
import functools

import jax
import jax.numpy as jnp
from jax.experimental import pallas as pl
from jax.experimental.pallas import tpu as pltpu

# Set to jnp.bfloat16 on v6e / v7x for the native fast MXU path (halves HBM
# traffic).  Default f32 keeps exact-parity semantics with the PyTorch module.
COMPUTE_DTYPE = jnp.float32

_VMEM_LIMIT = 32 * 1024 * 1024  # explicit scoped-VMEM budget (fits all gens)


def _round_up(x, m):
    return (x + m - 1) // m * m


# ----------------------------------------------------------------------------
# Pallas kernels
# ----------------------------------------------------------------------------
def _conv_pool_kernel(w_ref, b_ref, c_ref, o_ref):
    """Fused conv-matmul + bias + ReLU + 2x2 max-pool (transposed layout).

    w_ref : (OC_pad, K_pad)        packed conv weight
    b_ref : (OC_pad, 1)            bias (f32)
    c_ref : (4, K_pad, TILE_M)     im2col columns of the 4 pool sub-grids
    o_ref : (OC_pad, TILE_M)       pooled output tile (lane-dense)
    """
    w = w_ref[...]
    # max over the 4 pool positions; bias+ReLU commute with the max.
    m = jnp.dot(w, c_ref[0], preferred_element_type=jnp.float32)
    for p in range(1, 4):
        m = jnp.maximum(m, jnp.dot(w, c_ref[p], preferred_element_type=jnp.float32))
    # f32 epilogue (no bf16 VPU math -> v5e safe)
    o_ref[...] = jnp.maximum(m + b_ref[...], 0.0).astype(o_ref.dtype)


def _mlp_kernel(x_ref, w1_ref, b1_ref, w2_ref, b2_ref, w3_ref, b3_ref, o_ref):
    """Fused fc1(+ReLU) -> fc2(+ReLU) -> fc3 on a row tile of x."""
    h = jnp.dot(x_ref[...], w1_ref[...], preferred_element_type=jnp.float32)
    h = jnp.maximum(h + b1_ref[...], 0.0)
    h = jnp.dot(h.astype(w2_ref.dtype), w2_ref[...],
                preferred_element_type=jnp.float32)
    h = jnp.maximum(h + b2_ref[...], 0.0)
    o = jnp.dot(h.astype(w3_ref.dtype), w3_ref[...],
                preferred_element_type=jnp.float32) + b3_ref[...]
    o_ref[...] = o.astype(o_ref.dtype)


# ----------------------------------------------------------------------------
# Wrappers
# ----------------------------------------------------------------------------
def conv_relu_pool(f_cnhw, w, b, *, tile_m=512):
    """Fused Conv2d(5x5, stride 1, VALID) + ReLU + MaxPool2d(2,2).

    f_cnhw : (C, N, H, W)  channel-major feature map (f32)
    w      : (OC, C, KH, KW) PyTorch-layout conv weight
    b      : (OC,) bias
    returns: (OC, N, PH, PW) pooled feature map, PH = (H-KH+1)//2
    """
    C, N, H, W = f_cnhw.shape
    OC, _, KH, KW = w.shape
    OH, OW = H - KH + 1, W - KW + 1
    PH, PW = OH // 2, OW // 2
    K = C * KH * KW
    Mp = N * PH * PW

    # --- im2col (XLA glue, streamed through VMEM by the M grid) ------------
    # k index order = (c, ki, kj)  -> matches w.reshape(OC, C*KH*KW)
    taps = [f_cnhw[:, :, ki:ki + OH, kj:kj + OW]
            for ki in range(KH) for kj in range(KW)]         # each (C, N, OH, OW)
    cols = jnp.stack(taps, axis=1)                           # (C, KH*KW, N, OH, OW)
    cols = cols.reshape(K, N, PH, 2, PW, 2)                  # split into pool sub-grids
    cols = cols.transpose(3, 5, 0, 1, 2, 4)                  # (2, 2, K, N, PH, PW)
    cols = cols.reshape(4, K, Mp)                            # p = di*2 + dj

    # --- pad to (8,128)-aligned, lane-dense shapes --------------------------
    K_pad = _round_up(K, 128)
    OC_pad = _round_up(OC, 8)
    tile_m = min(tile_m, _round_up(Mp, 128))
    Mp_pad = _round_up(Mp, tile_m)

    cols = jnp.pad(cols, ((0, 0), (0, K_pad - K), (0, Mp_pad - Mp)))
    wmat = jnp.pad(w.reshape(OC, K), ((0, OC_pad - OC), (0, K_pad - K)))
    bcol = jnp.pad(b, (0, OC_pad - OC)).reshape(OC_pad, 1).astype(jnp.float32)

    cols = cols.astype(COMPUTE_DTYPE)
    wmat = wmat.astype(COMPUTE_DTYPE)

    grid = (Mp_pad // tile_m,)
    out = pl.pallas_call(
        _conv_pool_kernel,
        out_shape=jax.ShapeDtypeStruct((OC_pad, Mp_pad), jnp.float32),
        grid_spec=pltpu.PrefetchScalarGridSpec(
            num_scalar_prefetch=0,
            grid=grid,
            in_specs=[
                pl.BlockSpec((OC_pad, K_pad), lambda i: (0, 0)),
                pl.BlockSpec((OC_pad, 1), lambda i: (0, 0)),
                pl.BlockSpec((4, K_pad, tile_m), lambda i: (0, 0, i)),
            ],
            out_specs=pl.BlockSpec((OC_pad, tile_m), lambda i: (0, i)),
        ),
        compiler_params=pltpu.CompilerParams(
            dimension_semantics=("parallel",),
            vmem_limit_bytes=_VMEM_LIMIT,
        ),
    )(wmat, bcol, cols)

    return out[:OC, :Mp].reshape(OC, N, PH, PW)


def mlp3(x, w1, b1, w2, b2, w3, b3, *, tile_n=256):
    """Fused (Linear+ReLU) x2 + Linear.  x: (N, K1) f32 -> (N, OUT) f32."""
    N, K1 = x.shape
    H1, H2, OUT = w1.shape[1], w2.shape[1], w3.shape[1]
    K1p, H1p = _round_up(K1, 128), _round_up(H1, 128)
    H2p, OUTp = _round_up(H2, 128), _round_up(OUT, 128)
    tile_n = min(tile_n, _round_up(N, 8))
    Np = _round_up(N, tile_n)

    xp = jnp.pad(x, ((0, Np - N), (0, K1p - K1))).astype(COMPUTE_DTYPE)
    w1p = jnp.pad(w1, ((0, K1p - K1), (0, H1p - H1))).astype(COMPUTE_DTYPE)
    w2p = jnp.pad(w2, ((0, H1p - H1), (0, H2p - H2))).astype(COMPUTE_DTYPE)
    w3p = jnp.pad(w3, ((0, H2p - H2), (0, OUTp - OUT))).astype(COMPUTE_DTYPE)
    b1p = jnp.pad(b1, (0, H1p - H1)).reshape(1, H1p).astype(jnp.float32)
    b2p = jnp.pad(b2, (0, H2p - H2)).reshape(1, H2p).astype(jnp.float32)
    b3p = jnp.pad(b3, (0, OUTp - OUT)).reshape(1, OUTp).astype(jnp.float32)

    grid = (Np // tile_n,)
    out = pl.pallas_call(
        _mlp_kernel,
        out_shape=jax.ShapeDtypeStruct((Np, OUTp), jnp.float32),
        grid_spec=pltpu.PrefetchScalarGridSpec(
            num_scalar_prefetch=0,
            grid=grid,
            in_specs=[
                pl.BlockSpec((tile_n, K1p), lambda i: (i, 0)),
                pl.BlockSpec((K1p, H1p), lambda i: (0, 0)),
                pl.BlockSpec((1, H1p), lambda i: (0, 0)),
                pl.BlockSpec((H1p, H2p), lambda i: (0, 0)),
                pl.BlockSpec((1, H2p), lambda i: (0, 0)),
                pl.BlockSpec((H2p, OUTp), lambda i: (0, 0)),
                pl.BlockSpec((1, OUTp), lambda i: (0, 0)),
            ],
            out_specs=pl.BlockSpec((tile_n, OUTp), lambda i: (i, 0)),
        ),
        compiler_params=pltpu.CompilerParams(
            dimension_semantics=("parallel",),
            vmem_limit_bytes=_VMEM_LIMIT,
        ),
    )(xp, w1p, b1p, w2p, b2p, w3p, b3p)
    return out[:N, :OUT]


# ----------------------------------------------------------------------------
# LeNet
# ----------------------------------------------------------------------------
def init_params(key):
    def uni(k, shape, fan_in):
        bound = 1.0 / (fan_in ** 0.5)
        return jax.random.uniform(k, shape, jnp.float32, -bound, bound)

    ks = jax.random.split(key, 10)
    return {
        "conv1_w": uni(ks[0], (6, 3, 5, 5), 3 * 5 * 5),
        "conv1_b": uni(ks[1], (6,), 3 * 5 * 5),
        "conv2_w": uni(ks[2], (16, 6, 5, 5), 6 * 5 * 5),
        "conv2_b": uni(ks[3], (16,), 6 * 5 * 5),
        "fc1_w": uni(ks[4], (16 * 5 * 5, 120), 16 * 5 * 5),   # stored (in, out)
        "fc1_b": uni(ks[5], (120,), 16 * 5 * 5),
        "fc2_w": uni(ks[6], (120, 84), 120),
        "fc2_b": uni(ks[7], (84,), 120),
        "fc3_w": uni(ks[8], (84, 10), 84),
        "fc3_b": uni(ks[9], (10,), 84),
    }


def lenet_forward(params, x, use_dropout=False):
    """x: (N, 3, 32, 32) f32 NCHW -> logits (N, 10) f32."""
    N = x.shape[0]
    f = x.transpose(1, 0, 2, 3)                                   # (3, N, 32, 32)
    f = conv_relu_pool(f, params["conv1_w"], params["conv1_b"])   # (6, N, 14, 14)
    f = conv_relu_pool(f, params["conv2_w"], params["conv2_b"])   # (16, N, 5, 5)
    # restore PyTorch NCHW flatten order: feature index = c*25 + ph*5 + pw
    feats = f.transpose(1, 0, 2, 3).reshape(N, -1)                # (N, 400)
    # TODO(synk): training-mode nn.Dropout(p=0.5) is stochastic; eval-mode
    # (identity) semantics are used here regardless of use_dropout.
    return mlp3(feats,
                params["fc1_w"], params["fc1_b"],
                params["fc2_w"], params["fc2_b"],
                params["fc3_w"], params["fc3_b"])


# Plain-JAX reference (for a sanity check only).
def _reference_forward(params, x):
    y = jax.lax.conv_general_dilated(
        x, params["conv1_w"], (1, 1), "VALID",
        dimension_numbers=("NCHW", "OIHW", "NCHW"))
    y = jax.nn.relu(y + params["conv1_b"][None, :, None, None])
    y = jax.lax.reduce_window(y, -jnp.inf, jax.lax.max,
                              (1, 1, 2, 2), (1, 1, 2, 2), "VALID")
    y = jax.lax.conv_general_dilated(
        y, params["conv2_w"], (1, 1), "VALID",
        dimension_numbers=("NCHW", "OIHW", "NCHW"))
    y = jax.nn.relu(y + params["conv2_b"][None, :, None, None])
    y = jax.lax.reduce_window(y, -jnp.inf, jax.lax.max,
                              (1, 1, 2, 2), (1, 1, 2, 2), "VALID")
    y = y.reshape(x.shape[0], -1)
    y = jax.nn.relu(y @ params["fc1_w"] + params["fc1_b"])
    y = jax.nn.relu(y @ params["fc2_w"] + params["fc2_b"])
    return y @ params["fc3_w"] + params["fc3_b"]


if __name__ == "__main__":
    key = jax.random.PRNGKey(0)
    pkey, xkey = jax.random.split(key)
    params = init_params(pkey)

    # LeNet expects 3x32x32 input so conv->pool->conv->pool yields 16*5*5=400.
    x = jax.random.normal(xkey, (2, 3, 32, 32), dtype=jnp.float32)

    fwd = jax.jit(functools.partial(lenet_forward, use_dropout=False))
    logits = jax.block_until_ready(fwd(params, x))
    assert logits.shape == (2, 10), logits.shape

    if COMPUTE_DTYPE == jnp.float32:
        ref = jax.block_until_ready(jax.jit(_reference_forward)(params, x))
        assert jnp.allclose(logits, ref, atol=5e-2, rtol=5e-2), (
            "mismatch vs reference:\n%s\n%s" % (logits, ref))

    print("KERNEL_OK")
</pallas_src>

<mosaic_0001>
module attributes {stable_mosaic.version = 11 : i64} {
  func.func @_conv_pool_kernel(%arg0: i32, %arg1: memref<8x128xf32, #tpu.memory_space<vmem>>, %arg2: memref<8x1xf32, #tpu.memory_space<vmem>>, %arg3: memref<4x128x512xf32, #tpu.memory_space<vmem>>, %arg4: memref<8x512xf32, #tpu.memory_space<vmem>>) attributes {dimension_semantics = [#tpu.dimension_semantics<parallel>], iteration_bounds = array<i64: 1>, scalar_prefetch = 0 : i64, scratch_operands = 0 : i64, tpu.core_type = #tpu.core_type<tc>, window_params = [{pipeline_mode = #tpu.pipeline_mode<synchronous>, transform_indices = @transform_0, window_bounds = array<i64: 8, 128>}, {pipeline_mode = #tpu.pipeline_mode<synchronous>, transform_indices = @transform_1, window_bounds = array<i64: 8, 1>}, {transform_indices = @transform_2, window_bounds = array<i64: 4, 128, 512>}, {transform_indices = @transform_3, window_bounds = array<i64: 8, 512>}]} {
    %c0 = arith.constant 0 : index
    %c0_0 = arith.constant 0 : index
    %0 = vector.load %arg1[%c0, %c0_0] : memref<8x128xf32, #tpu.memory_space<vmem>>, vector<8x128xf32>
    %c0_1 = arith.constant 0 : index
    %c0_2 = arith.constant 0 : index
    %c0_3 = arith.constant 0 : index
    %1 = vector.load %arg3[%c0_1, %c0_2, %c0_3] : memref<4x128x512xf32, #tpu.memory_space<vmem>>, vector<1x128x512xf32>
    %2 = vector.shape_cast %1 : vector<1x128x512xf32> to vector<128x512xf32>
    %cst = arith.constant dense<0.000000e+00> : vector<8x512xf32>
    %3 = tpu.matmul %0, %2, %cst {dimension_numbers = #tpu.dot_dimension_numbers<[1], [0], [0], [1], [0, 0, 1, 1], [], []>} : vector<8x128xf32>, vector<128x512xf32>, vector<8x512xf32> -> vector<8x512xf32>
    %c1 = arith.constant 1 : index
    %c0_4 = arith.constant 0 : index
    %c0_5 = arith.constant 0 : index
    %4 = vector.load %arg3[%c1, %c0_4, %c0_5] : memref<4x128x512xf32, #tpu.memory_space<vmem>>, vector<1x128x512xf32>
    %5 = vector.shape_cast %4 : vector<1x128x512xf32> to vector<128x512xf32>
    %cst_6 = arith.constant dense<0.000000e+00> : vector<8x512xf32>
    %6 = tpu.matmul %0, %5, %cst_6 {dimension_numbers = #tpu.dot_dimension_numbers<[1], [0], [0], [1], [0, 0, 1, 1], [], []>} : vector<8x128xf32>, vector<128x512xf32>, vector<8x512xf32> -> vector<8x512xf32>
    %7 = arith.maximumf %3, %6 : vector<8x512xf32>
    %c2 = arith.constant 2 : index
    %c0_7 = arith.constant 0 : index
    %c0_8 = arith.constant 0 : index
    %8 = vector.load %arg3[%c2, %c0_7, %c0_8] : memref<4x128x512xf32, #tpu.memory_space<vmem>>, vector<1x128x512xf32>
    %9 = vector.shape_cast %8 : vector<1x128x512xf32> to vector<128x512xf32>
    %cst_9 = arith.constant dense<0.000000e+00> : vector<8x512xf32>
    %10 = tpu.matmul %0, %9, %cst_9 {dimension_numbers = #tpu.dot_dimension_numbers<[1], [0], [0], [1], [0, 0, 1, 1], [], []>} : vector<8x128xf32>, vector<128x512xf32>, vector<8x512xf32> -> vector<8x512xf32>
    %11 = arith.maximumf %7, %10 : vector<8x512xf32>
    %c3 = arith.constant 3 : index
    %c0_10 = arith.constant 0 : index
    %c0_11 = arith.constant 0 : index
    %12 = vector.load %arg3[%c3, %c0_10, %c0_11] : memref<4x128x512xf32, #tpu.memory_space<vmem>>, vector<1x128x512xf32>
    %13 = vector.shape_cast %12 : vector<1x128x512xf32> to vector<128x512xf32>
    %cst_12 = arith.constant dense<0.000000e+00> : vector<8x512xf32>
    %14 = tpu.matmul %0, %13, %cst_12 {dimension_numbers = #tpu.dot_dimension_numbers<[1], [0], [0], [1], [0, 0, 1, 1], [], []>} : vector<8x128xf32>, vector<128x512xf32>, vector<8x512xf32> -> vector<8x512xf32>
    %15 = arith.maximumf %11, %14 : vector<8x512xf32>
    %c0_13 = arith.constant 0 : index
    %c0_14 = arith.constant 0 : index
    %16 = vector.load %arg2[%c0_13, %c0_14] : memref<8x1xf32, #tpu.memory_space<vmem>>, vector<8x1xf32>
    %17 = vector.broadcast %16 : vector<8x1xf32> to vector<8x512xf32>
    %18 = arith.addf %15, %17 : vector<8x512xf32>
    %cst_15 = arith.constant 0.000000e+00 : f32
    %19 = vector.broadcast %cst_15 : f32 to vector<8x512xf32>
    %20 = arith.maximumf %18, %19 : vector<8x512xf32>
    %c0_16 = arith.constant 0 : index
    %c0_17 = arith.constant 0 : index
    %21 = vector.load %arg4[%c0_16, %c0_17] : memref<8x512xf32, #tpu.memory_space<vmem>>, vector<8x512xf32>
    tpu.vector_store %arg4[%c0_16, %c0_17], %20 {strides = array<i32>} : memref<8x512xf32, #tpu.memory_space<vmem>>, vector<8x512xf32>,
    return
  }
  func.func @transform_0(%arg0: i32) -> (i32, i32) {
    %c0_i32 = arith.constant 0 : i32
    %c0_i32_0 = arith.constant 0 : i32
    %c0_i32_1 = arith.constant 0 : i32
    return %c0_i32, %c0_i32_0 : i32, i32
  }
  func.func @transform_1(%arg0: i32) -> (i32, i32) {
    %c0_i32 = arith.constant 0 : i32
    %c0_i32_0 = arith.constant 0 : i32
    %c0_i32_1 = arith.constant 0 : i32
    return %c0_i32, %c0_i32_0 : i32, i32
  }
  func.func @transform_2(%arg0: i32) -> (i32, i32, i32) {
    %c0_i32 = arith.constant 0 : i32
    %c0_i32_0 = arith.constant 0 : i32
    %c0_i32_1 = arith.constant 0 : i32
    return %c0_i32, %c0_i32_0, %arg0 : i32, i32, i32
  }
  func.func @transform_3(%arg0: i32) -> (i32, i32) {
    %c0_i32 = arith.constant 0 : i32
    %c0_i32_0 = arith.constant 0 : i32
    return %c0_i32, %arg0 : i32, i32
  }
}

module attributes {stable_mosaic.version = 11 : i64} {
  func.func @_conv_pool_kernel(%arg0: i32, %arg1: memref<16x256xf32, #tpu.memory_space<vmem>>, %arg2: memref<16x1xf32, #tpu.memory_space<vmem>>, %arg3: memref<4x256x128xf32, #tpu.memory_space<vmem>>, %arg4: memref<16x128xf32, #tpu.memory_space<vmem>>) attributes {dimension_semantics = [#tpu.dimension_semantics<parallel>], iteration_bounds = array<i64: 1>, scalar_prefetch = 0 : i64, scratch_operands = 0 : i64, tpu.core_type = #tpu.core_type<tc>, window_params = [{pipeline_mode = #tpu.pipeline_mode<synchronous>, transform_indices = @transform_0, window_bounds = array<i64: 16, 256>}, {pipeline_mode = #tpu.pipeline_mode<synchronous>, transform_indices = @transform_1, window_bounds = array<i64: 16, 1>}, {transform_indices = @transform_2, window_bounds = array<i64: 4, 256, 128>}, {transform_indices = @transform_3, window_bounds = array<i64: 16, 128>}]} {
    %c0 = arith.constant 0 : index
    %c0_0 = arith.constant 0 : index
    %0 = vector.load %arg1[%c0, %c0_0] : memref<16x256xf32, #tpu.memory_space<vmem>>, vector<16x256xf32>
    %c0_1 = arith.constant 0 : index
    %c0_2 = arith.constant 0 : index
    %c0_3 = arith.constant 0 : index
    %1 = vector.load %arg3[%c0_1, %c0_2, %c0_3] : memref<4x256x128xf32, #tpu.memory_space<vmem>>, vector<1x256x128xf32>
    %2 = vector.shape_cast %1 : vector<1x256x128xf32> to vector<256x128xf32>
    %cst = arith.constant dense<0.000000e+00> : vector<16x128xf32>
    %3 = tpu.matmul %0, %2, %cst {dimension_numbers = #tpu.dot_dimension_numbers<[1], [0], [0], [1], [0, 0, 1, 1], [], []>} : vector<16x256xf32>, vector<256x128xf32>, vector<16x128xf32> -> vector<16x128xf32>
    %c1 = arith.constant 1 : index
    %c0_4 = arith.constant 0 : index
    %c0_5 = arith.constant 0 : index
    %4 = vector.load %arg3[%c1, %c0_4, %c0_5] : memref<4x256x128xf32, #tpu.memory_space<vmem>>, vector<1x256x128xf32>
    %5 = vector.shape_cast %4 : vector<1x256x128xf32> to vector<256x128xf32>
    %cst_6 = arith.constant dense<0.000000e+00> : vector<16x128xf32>
    %6 = tpu.matmul %0, %5, %cst_6 {dimension_numbers = #tpu.dot_dimension_numbers<[1], [0], [0], [1], [0, 0, 1, 1], [], []>} : vector<16x256xf32>, vector<256x128xf32>, vector<16x128xf32> -> vector<16x128xf32>
    %7 = arith.maximumf %3, %6 : vector<16x128xf32>
    %c2 = arith.constant 2 : index
    %c0_7 = arith.constant 0 : index
    %c0_8 = arith.constant 0 : index
    %8 = vector.load %arg3[%c2, %c0_7, %c0_8] : memref<4x256x128xf32, #tpu.memory_space<vmem>>, vector<1x256x128xf32>
    %9 = vector.shape_cast %8 : vector<1x256x128xf32> to vector<256x128xf32>
    %cst_9 = arith.constant dense<0.000000e+00> : vector<16x128xf32>
    %10 = tpu.matmul %0, %9, %cst_9 {dimension_numbers = #tpu.dot_dimension_numbers<[1], [0], [0], [1], [0, 0, 1, 1], [], []>} : vector<16x256xf32>, vector<256x128xf32>, vector<16x128xf32> -> vector<16x128xf32>
    %11 = arith.maximumf %7, %10 : vector<16x128xf32>
    %c3 = arith.constant 3 : index
    %c0_10 = arith.constant 0 : index
    %c0_11 = arith.constant 0 : index
    %12 = vector.load %arg3[%c3, %c0_10, %c0_11] : memref<4x256x128xf32, #tpu.memory_space<vmem>>, vector<1x256x128xf32>
    %13 = vector.shape_cast %12 : vector<1x256x128xf32> to vector<256x128xf32>
    %cst_12 = arith.constant dense<0.000000e+00> : vector<16x128xf32>
    %14 = tpu.matmul %0, %13, %cst_12 {dimension_numbers = #tpu.dot_dimension_numbers<[1], [0], [0], [1], [0, 0, 1, 1], [], []>} : vector<16x256xf32>, vector<256x128xf32>, vector<16x128xf32> -> vector<16x128xf32>
    %15 = arith.maximumf %11, %14 : vector<16x128xf32>
    %c0_13 = arith.constant 0 : index
    %c0_14 = arith.constant 0 : index
    %16 = vector.load %arg2[%c0_13, %c0_14] : memref<16x1xf32, #tpu.memory_space<vmem>>, vector<16x1xf32>
    %17 = vector.broadcast %16 : vector<16x1xf32> to vector<16x128xf32>
    %18 = arith.addf %15, %17 : vector<16x128xf32>
    %cst_15 = arith.constant 0.000000e+00 : f32
    %19 = vector.broadcast %cst_15 : f32 to vector<16x128xf32>
    %20 = arith.maximumf %18, %19 : vector<16x128xf32>
    %c0_16 = arith.constant 0 : index
    %c0_17 = arith.constant 0 : index
    %21 = vector.load %arg4[%c0_16, %c0_17] : memref<16x128xf32, #tpu.memory_space<vmem>>, vector<16x128xf32>
    tpu.vector_store %arg4[%c0_16, %c0_17], %20 {strides = array<i32>} : memref<16x128xf32, #tpu.memory_space<vmem>>, vector<16x128xf32>,
    return
  }
  func.func @transform_0(%arg0: i32) -> (i32, i32) {
    %c0_i32 = arith.constant 0 : i32
    %c0_i32_0 = arith.constant 0 : i32
    %c0_i32_1 = arith.constant 0 : i32
    return %c0_i32, %c0_i32_0 : i32, i32
  }
  func.func @transform_1(%arg0: i32) -> (i32, i32) {
    %c0_i32 = arith.constant 0 : i32
    %c0_i32_0 = arith.constant 0 : i32
    %c0_i32_1 = arith.constant 0 : i32
    return %c0_i32, %c0_i32_0 : i32, i32
  }
  func.func @transform_2(%arg0: i32) -> (i32, i32, i32) {
    %c0_i32 = arith.constant 0 : i32
    %c0_i32_0 = arith.constant 0 : i32
    %c0_i32_1 = arith.constant 0 : i32
    return %c0_i32, %c0_i32_0, %arg0 : i32, i32, i32
  }
  func.func @transform_3(%arg0: i32) -> (i32, i32) {
    %c0_i32 = arith.constant 0 : i32
    %c0_i32_0 = arith.constant 0 : i32
    return %c0_i32, %arg0 : i32, i32
  }
}

module attributes {stable_mosaic.version = 11 : i64} {
  func.func @_mlp_kernel(%arg0: i32, %arg1: memref<8x512xf32, #tpu.memory_space<vmem>>, %arg2: memref<512x128xf32, #tpu.memory_space<vmem>>, %arg3: memref<1x128xf32, #tpu.memory_space<vmem>>, %arg4: memref<128x128xf32, #tpu.memory_space<vmem>>, %arg5: memref<1x128xf32, #tpu.memory_space<vmem>>, %arg6: memref<128x128xf32, #tpu.memory_space<vmem>>, %arg7: memref<1x128xf32, #tpu.memory_space<vmem>>, %arg8: memref<8x128xf32, #tpu.memory_space<vmem>>) attributes {dimension_semantics = [#tpu.dimension_semantics<parallel>], iteration_bounds = array<i64: 1>, scalar_prefetch = 0 : i64, scratch_operands = 0 : i64, tpu.core_type = #tpu.core_type<tc>, window_params = [{transform_indices = @transform_0, window_bounds = array<i64: 8, 512>}, {pipeline_mode = #tpu.pipeline_mode<synchronous>, transform_indices = @transform_1, window_bounds = array<i64: 512, 128>}, {pipeline_mode = #tpu.pipeline_mode<synchronous>, transform_indices = @transform_2, window_bounds = array<i64: 1, 128>}, {pipeline_mode = #tpu.pipeline_mode<synchronous>, transform_indices = @transform_3, window_bounds = array<i64: 128, 128>}, {pipeline_mode = #tpu.pipeline_mode<synchronous>, transform_indices = @transform_4, window_bounds = array<i64: 1, 128>}, {pipeline_mode = #tpu.pipeline_mode<synchronous>, transform_indices = @transform_5, window_bounds = array<i64: 128, 128>}, {pipeline_mode = #tpu.pipeline_mode<synchronous>, transform_indices = @transform_6, window_bounds = array<i64: 1, 128>}, {transform_indices = @transform_7, window_bounds = array<i64: 8, 128>}]} {
    %c0 = arith.constant 0 : index
    %c0_0 = arith.constant 0 : index
    %0 = vector.load %arg1[%c0, %c0_0] : memref<8x512xf32, #tpu.memory_space<vmem>>, vector<8x512xf32>
    %c0_1 = arith.constant 0 : index
    %c0_2 = arith.constant 0 : index
    %1 = vector.load %arg2[%c0_1, %c0_2] : memref<512x128xf32, #tpu.memory_space<vmem>>, vector<512x128xf32>
    %cst = arith.constant dense<0.000000e+00> : vector<8x128xf32>
    %2 = tpu.matmul %0, %1, %cst {dimension_numbers = #tpu.dot_dimension_numbers<[1], [0], [0], [1], [0, 0, 1, 1], [], []>} : vector<8x512xf32>, vector<512x128xf32>, vector<8x128xf32> -> vector<8x128xf32>
    %c0_3 = arith.constant 0 : index
    %c0_4 = arith.constant 0 : index
    %3 = vector.load %arg3[%c0_3, %c0_4] : memref<1x128xf32, #tpu.memory_space<vmem>>, vector<1x128xf32>
    %4 = vector.broadcast %3 : vector<1x128xf32> to vector<8x128xf32>
    %5 = arith.addf %2, %4 : vector<8x128xf32>
    %cst_5 = arith.constant 0.000000e+00 : f32
    %6 = vector.broadcast %cst_5 : f32 to vector<8x128xf32>
    %7 = arith.maximumf %5, %6 : vector<8x128xf32>
    %c0_6 = arith.constant 0 : index
    %c0_7 = arith.constant 0 : index
    %8 = vector.load %arg4[%c0_6, %c0_7] : memref<128x128xf32, #tpu.memory_space<vmem>>, vector<128x128xf32>
    %cst_8 = arith.constant dense<0.000000e+00> : vector<8x128xf32>
    %9 = tpu.matmul %7, %8, %cst_8 {dimension_numbers = #tpu.dot_dimension_numbers<[1], [0], [0], [1], [0, 0, 1, 1], [], []>} : vector<8x128xf32>, vector<128x128xf32>, vector<8x128xf32> -> vector<8x128xf32>
    %c0_9 = arith.constant 0 : index
    %c0_10 = arith.constant 0 : index
    %10 = vector.load %arg5[%c0_9, %c0_10] : memref<1x128xf32, #tpu.memory_space<vmem>>, vector<1x128xf32>
    %11 = vector.broadcast %10 : vector<1x128xf32> to vector<8x128xf32>
    %12 = arith.addf %9, %11 : vector<8x128xf32>
    %cst_11 = arith.constant 0.000000e+00 : f32
    %13 = vector.broadcast %cst_11 : f32 to vector<8x128xf32>
    %14 = arith.maximumf %12, %13 : vector<8x128xf32>
    %c0_12 = arith.constant 0 : index
    %c0_13 = arith.constant 0 : index
    %15 = vector.load %arg6[%c0_12, %c0_13] : memref<128x128xf32, #tpu.memory_space<vmem>>, vector<128x128xf32>
    %cst_14 = arith.constant dense<0.000000e+00> : vector<8x128xf32>
    %16 = tpu.matmul %14, %15, %cst_14 {dimension_numbers = #tpu.dot_dimension_numbers<[1], [0], [0], [1], [0, 0, 1, 1], [], []>} : vector<8x128xf32>, vector<128x128xf32>, vector<8x128xf32> -> vector<8x128xf32>
    %c0_15 = arith.constant 0 : index
    %c0_16 = arith.constant 0 : index
    %17 = vector.load %arg7[%c0_15, %c0_16] : memref<1x128xf32, #tpu.memory_space<vmem>>, vector<1x128xf32>
    %18 = vector.broadcast %17 : vector<1x128xf32> to vector<8x128xf32>
    %19 = arith.addf %16, %18 : vector<8x128xf32>
    %c0_17 = arith.constant 0 : index
    %c0_18 = arith.constant 0 : index
    %20 = vector.load %arg8[%c0_17, %c0_18] : memref<8x128xf32, #tpu.memory_space<vmem>>, vector<8x128xf32>
    tpu.vector_store %arg8[%c0_17, %c0_18], %19 {strides = array<i32>} : memref<8x128xf32, #tpu.memory_space<vmem>>, vector<8x128xf32>,
    return
  }
  func.func @transform_0(%arg0: i32) -> (i32, i32) {
    %c0_i32 = arith.constant 0 : i32
    %c0_i32_0 = arith.constant 0 : i32
    return %arg0, %c0_i32 : i32, i32
  }
  func.func @transform_1(%arg0: i32) -> (i32, i32) {
    %c0_i32 = arith.constant 0 : i32
    %c0_i32_0 = arith.constant 0 : i32
    %c0_i32_1 = arith.constant 0 : i32
    return %c0_i32, %c0_i32_0 : i32, i32
  }
  func.func @transform_2(%arg0: i32) -> (i32, i32) {
    %c0_i32 = arith.constant 0 : i32
    %c0_i32_0 = arith.constant 0 : i32
    %c0_i32_1 = arith.constant 0 : i32
    return %c0_i32, %c0_i32_0 : i32, i32
  }
  func.func @transform_3(%arg0: i32) -> (i32, i32) {
    %c0_i32 = arith.constant 0 : i32
    %c0_i32_0 = arith.constant 0 : i32
    %c0_i32_1 = arith.constant 0 : i32
    return %c0_i32, %c0_i32_0 : i32, i32
  }
  func.func @transform_4(%arg0: i32) -> (i32, i32) {
    %c0_i32 = arith.constant 0 : i32
    %c0_i32_0 = arith.constant 0 : i32
    %c0_i32_1 = arith.constant 0 : i32
    return %c0_i32, %c0_i32_0 : i32, i32
  }
  func.func @transform_5(%arg0: i32) -> (i32, i32) {
    %c0_i32 = arith.constant 0 : i32
    %c0_i32_0 = arith.constant 0 : i32
    %c0_i32_1 = arith.constant 0 : i32
    return %c0_i32, %c0_i32_0 : i32, i32
  }
  func.func @transform_6(%arg0: i32) -> (i32, i32) {
    %c0_i32 = arith.constant 0 : i32
    %c0_i32_0 = arith.constant 0 : i32
    %c0_i32_1 = arith.constant 0 : i32
    return %c0_i32, %c0_i32_0 : i32, i32
  }
  func.func @transform_7(%arg0: i32) -> (i32, i32) {
    %c0_i32 = arith.constant 0 : i32
    %c0_i32_0 = arith.constant 0 : i32
    return %arg0, %c0_i32 : i32, i32
  }
}

</mosaic_0001>

<bundles_post_ra>
// kernel: lenet_forward.3
= control target key start
LH: loop header
LB: loop body
LE: loop exit
PB: predicated region body
PF: predicated region fallthrough
CT: control target
= control target key end

     0   :  { %s1647_s2 = inlined_call_operand.vmem [shape: f32[4,128,512], index: 2, kind: input, shape index: {}]   ;;  %s1648_s0 = inlined_call_operand.vmem [shape: f32[8,128], index: 0, kind: input, shape index: {}]   ;;  %s1649_s1 = inlined_call_operand.vmem [shape: f32[8,1], index: 1, kind: input, shape index: {}]   ;;  %s1650_s3 = inlined_call_operand.vmem [shape: f32[8,512], index: 3, kind: output, shape index: {}]  }
   0x1   :  { %v75_v0 = vld [vmem:[%s1647_s2 + $0x1e0] sm:$0xff]  ;;  %v76_v1 = vld [vmem:[%s1647_s2 + $0x1e8] sm:$0xff]  ;;  %v77_v2 = vld [vmem:[%s1647_s2 + $0x1f0] sm:$0xff] }
   0x2   :  { %79 = vmatpush.msra.mxu0 %v75_v0  ;;  %99 = vmatpush.msra.mxu1 %v76_v1  ;;  %v78_v3 = vld [vmem:[%s1647_s2 + $0x1f8] sm:$0xff]  ;;  %v71_v4 = vld [vmem:[%s1647_s2 + $0x1c0] sm:$0xff]  ;;  %v72_v5 = vld [vmem:[%s1647_s2 + $0x1c8] sm:$0xff] }
   0x3   :  { %119 = vmatpush.msra.mxu2 %v77_v2  ;;  %139 = vmatpush.msra.mxu3 %v78_v3  ;;  %v73_v6 = vld [vmem:[%s1647_s2 + $0x1d0] sm:$0xff]  ;;  %v74_v7 = vld [vmem:[%s1647_s2 + $0x1d8] sm:$0xff]  ;;  %v67_v8 = vld [vmem:[%s1647_s2 + $0x1a0] sm:$0xff] }
   0x4   :  { %80 = vmatpush.msra.mxu0 %v71_v4  ;;  %100 = vmatpush.msra.mxu1 %v72_v5  ;;  %v68_v9 = vld [vmem:[%s1647_s2 + $0x1a8] sm:$0xff]  ;;  %v69_v10 = vld [vmem:[%s1647_s2 + $0x1b0] sm:$0xff]  ;;  %v70_v11 = vld [vmem:[%s1647_s2 + $0x1b8] sm:$0xff] }
   0x5   :  { %120 = vmatpush.msra.mxu2 %v73_v6  ;;  %140 = vmatpush.msra.mxu3 %v74_v7  ;;  %v63_v12 = vld [vmem:[%s1647_s2 + $0x180] sm:$0xff]  ;;  %v64_v13 = vld [vmem:[%s1647_s2 + $0x188] sm:$0xff]  ;;  %v65_v14 = vld [vmem:[%s1647_s2 + $0x190] sm:$0xff] }
   0x6   :  { %81 = vmatpush.msra.mxu0 %v67_v8  ;;  %101 = vmatpush.msra.mxu1 %v68_v9  ;;  %v66_v15 = vld [vmem:[%s1647_s2 + $0x198] sm:$0xff]  ;;  %v59_v16 = vld [vmem:[%s1647_s2 + $0x160] sm:$0xff]  ;;  %v60_v17 = vld [vmem:[%s1647_s2 + $0x168] sm:$0xff] }
   0x7   :  { %121 = vmatpush.msra.mxu2 %v69_v10  ;;  %141 = vmatpush.msra.mxu3 %v70_v11  ;;  %v61_v18 = vld [vmem:[%s1647_s2 + $0x170] sm:$0xff]  ;;  %v62_v19 = vld [vmem:[%s1647_s2 + $0x178] sm:$0xff]  ;;  %v55_v20 = vld [vmem:[%s1647_s2 + $0x140] sm:$0xff] }
   0x8   :  { %82 = vmatpush.msra.mxu0 %v63_v12  ;;  %102 = vmatpush.msra.mxu1 %v64_v13  ;;  %v56_v21 = vld [vmem:[%s1647_s2 + $0x148] sm:$0xff]  ;;  %v57_v22 = vld [vmem:[%s1647_s2 + $0x150] sm:$0xff]  ;;  %v58_v23 = vld [vmem:[%s1647_s2 + $0x158] sm:$0xff] }
   0x9   :  { %122 = vmatpush.msra.mxu2 %v65_v14  ;;  %142 = vmatpush.msra.mxu3 %v66_v15  ;;  %v51_v24 = vld [vmem:[%s1647_s2 + $0x120] sm:$0xff]  ;;  %v52_v25 = vld [vmem:[%s1647_s2 + $0x128] sm:$0xff]  ;;  %v53_v26 = vld [vmem:[%s1647_s2 + $0x130] sm:$0xff] }
   0xa   :  { %83 = vmatpush.msra.mxu0 %v59_v16  ;;  %103 = vmatpush.msra.mxu1 %v60_v17  ;;  %v54_v27 = vld [vmem:[%s1647_s2 + $0x138] sm:$0xff]  ;;  %v47_v28 = vld [vmem:[%s1647_s2 + $0x100] sm:$0xff]  ;;  %v48_v29 = vld [vmem:[%s1647_s2 + $0x108] sm:$0xff] }
   0xb   :  { %123 = vmatpush.msra.mxu2 %v61_v18  ;;  %143 = vmatpush.msra.mxu3 %v62_v19  ;;  %v49_v30 = vld [vmem:[%s1647_s2 + $0x110] sm:$0xff]  ;;  %v50_v31 = vld [vmem:[%s1647_s2 + $0x118] sm:$0xff]  ;;  %v43_v32 = vld [vmem:[%s1647_s2 + $0xe0] sm:$0xff] }
   0xc   :  { %84 = vmatpush.msra.mxu0 %v55_v20  ;;  %104 = vmatpush.msra.mxu1 %v56_v21  ;;  %v44_v33 = vld [vmem:[%s1647_s2 + $0xe8] sm:$0xff]  ;;  %v45_v34 = vld [vmem:[%s1647_s2 + $0xf0] sm:$0xff]  ;;  %v46_v35 = vld [vmem:[%s1647_s2 + $0xf8] sm:$0xff] }
   0xd   :  { %124 = vmatpush.msra.mxu2 %v57_v22  ;;  %144 = vmatpush.msra.mxu3 %v58_v23  ;;  %v39_v36 = vld [vmem:[%s1647_s2 + $0xc0] sm:$0xff]  ;;  %v40_v37 = vld [vmem:[%s1647_s2 + $0xc8] sm:$0xff]  ;;  %v41_v38 = vld [vmem:[%s1647_s2 + $0xd0] sm:$0xff] }
   0xe   :  { %85 = vmatpush.msra.mxu0 %v51_v24  ;;  %105 = vmatpush.msra.mxu1 %v52_v25  ;;  %v42_v39 = vld [vmem:[%s1647_s2 + $0xd8] sm:$0xff]  ;;  %v35_v40 = vld [vmem:[%s1647_s2 + $0xa0] sm:$0xff]  ;;  %v36_v41 = vld [vmem:[%s1647_s2 + $0xa8] sm:$0xff] }
   0xf   :  { %125 = vmatpush.msra.mxu2 %v53_v26  ;;  %145 = vmatpush.msra.mxu3 %v54_v27  ;;  %v37_v42 = vld [vmem:[%s1647_s2 + $0xb0] sm:$0xff]  ;;  %v38_v43 = vld [vmem:[%s1647_s2 + $0xb8] sm:$0xff]  ;;  %v31_v44 = vld [vmem:[%s1647_s2 + $0x80] sm:$0xff] }
  0x10   :  { %86 = vmatpush.msra.mxu0 %v47_v28  ;;  %106 = vmatpush.msra.mxu1 %v48_v29  ;;  %v32_v45 = vld [vmem:[%s1647_s2 + $0x88] sm:$0xff]  ;;  %v33_v46 = vld [vmem:[%s1647_s2 + $0x90] sm:$0xff]  ;;  %v34_v47 = vld [vmem:[%s1647_s2 + $0x98] sm:$0xff] }
  0x11   :  { %126 = vmatpush.msra.mxu2 %v49_v30  ;;  %146 = vmatpush.msra.mxu3 %v50_v31  ;;  %v27_v48 = vld [vmem:[%s1647_s2 + $0x60] sm:$0xff]  ;;  %v28_v49 = vld [vmem:[%s1647_s2 + $0x68] sm:$0xff]  ;;  %v29_v50 = vld [vmem:[%s1647_s2 + $0x70] sm:$0xff] }
  0x12   :  { %87 = vmatpush.msra.mxu0 %v43_v32  ;;  %107 = vmatpush.msra.mxu1 %v44_v33  ;;  %v30_v51 = vld [vmem:[%s1647_s2 + $0x78] sm:$0xff]  ;;  %v23_v52 = vld [vmem:[%s1647_s2 + $0x40] sm:$0xff]  ;;  %v24_v53 = vld [vmem:[%s1647_s2 + $0x48] sm:$0xff] }
  0x13   :  { %127 = vmatpush.msra.mxu2 %v45_v34  ;;  %147 = vmatpush.msra.mxu3 %v46_v35  ;;  %v25_v54 = vld [vmem:[%s1647_s2 + $0x50] sm:$0xff]  ;;  %v26_v55 = vld [vmem:[%s1647_s2 + $0x58] sm:$0xff]  ;;  %v19_v56 = vld [vmem:[%s1647_s2 + $0x20] sm:$0xff] }
  0x14   :  { %88 = vmatpush.msra.mxu0 %v39_v36  ;;  %108 = vmatpush.msra.mxu1 %v40_v37  ;;  %v20_v57 = vld [vmem:[%s1647_s2 + $0x28] sm:$0xff]  ;;  %v21_v58 = vld [vmem:[%s1647_s2 + $0x30] sm:$0xff]  ;;  %v22_v59 = vld [vmem:[%s1647_s2 + $0x38] sm:$0xff] }
  0x15   :  { %128 = vmatpush.msra.mxu2 %v41_v38  ;;  %148 = vmatpush.msra.mxu3 %v42_v39  ;;  %v15_v60 = vld [vmem:[%s1647_s2] sm:$0xff]  ;;  %v16_v61 = vld [vmem:[%s1647_s2 + $0x8] sm:$0xff]  ;;  %v17_v62 = vld [vmem:[%s1647_s2 + $0x10] sm:$0xff] }
  0x16   :  { %89 = vmatpush.msra.mxu0 %v35_v40  ;;  %109 = vmatpush.msra.mxu1 %v36_v41  ;;  %v18_v63 = vld [vmem:[%s1647_s2 + $0x18] sm:$0xff]  ;;  %v688_v0 = vld [vmem:[%s1647_s2 + $0x3e0] sm:$0xff]  ;;  %v689_v1 = vld [vmem:[%s1647_s2 + $0x3e8] sm:$0xff] }
  0x17   :  { %129 = vmatpush.msra.mxu2 %v37_v42  ;;  %149 = vmatpush.msra.mxu3 %v38_v43  ;;  %v690_v2 = vld [vmem:[%s1647_s2 + $0x3f0] sm:$0xff]  ;;  %v691_v3 = vld [vmem:[%s1647_s2 + $0x3f8] sm:$0xff]  ;;  %v684_v4 = vld [vmem:[%s1647_s2 + $0x3c0] sm:$0xff] }
  0x18   :  { %90 = vmatpush.msra.mxu0 %v31_v44  ;;  %110 = vmatpush.msra.mxu1 %v32_v45  ;;  %v685_v5 = vld [vmem:[%s1647_s2 + $0x3c8] sm:$0xff]  ;;  %v686_v6 = vld [vmem:[%s1647_s2 + $0x3d0] sm:$0xff]  ;;  %v687_v7 = vld [vmem:[%s1647_s2 + $0x3d8] sm:$0xff] }
  0x19   :  { %130 = vmatpush.msra.mxu2 %v33_v46  ;;  %150 = vmatpush.msra.mxu3 %v34_v47  ;;  %v680_v8 = vld [vmem:[%s1647_s2 + $0x3a0] sm:$0xff]  ;;  %v681_v9 = vld [vmem:[%s1647_s2 + $0x3a8] sm:$0xff]  ;;  %v682_v10 = vld [vmem:[%s1647_s2 + $0x3b0] sm:$0xff] }
  0x1a   :  { %91 = vmatpush.msra.mxu0 %v27_v48  ;;  %111 = vmatpush.msra.mxu1 %v28_v49  ;;  %v683_v11 = vld [vmem:[%s1647_s2 + $0x3b8] sm:$0xff]  ;;  %v676_v12 = vld [vmem:[%s1647_s2 + $0x380] sm:$0xff]  ;;  %v677_v13 = vld [vmem:[%s1647_s2 + $0x388] sm:$0xff] }
  0x1b   :  { %131 = vmatpush.msra.mxu2 %v29_v50  ;;  %151 = vmatpush.msra.mxu3 %v30_v51  ;;  %v678_v14 = vld [vmem:[%s1647_s2 + $0x390] sm:$0xff]  ;;  %v679_v15 = vld [vmem:[%s1647_s2 + $0x398] sm:$0xff]  ;;  %v672_v16 = vld [vmem:[%s1647_s2 + $0x360] sm:$0xff] }
  0x1c   :  { %92 = vmatpush.msra.mxu0 %v23_v52  ;;  %112 = vmatpush.msra.mxu1 %v24_v53  ;;  %v673_v17 = vld [vmem:[%s1647_s2 + $0x368] sm:$0xff]  ;;  %v674_v18 = vld [vmem:[%s1647_s2 + $0x370] sm:$0xff]  ;;  %v675_v19 = vld [vmem:[%s1647_s2 + $0x378] sm:$0xff] }
  0x1d   :  { %132 = vmatpush.msra.mxu2 %v25_v54  ;;  %152 = vmatpush.msra.mxu3 %v26_v55  ;;  %v668_v20 = vld [vmem:[%s1647_s2 + $0x340] sm:$0xff]  ;;  %v669_v21 = vld [vmem:[%s1647_s2 + $0x348] sm:$0xff]  ;;  %v670_v22 = vld [vmem:[%s1647_s2 + $0x350] sm:$0xff] }
  0x1e   :  { %93 = vmatpush.msra.mxu0 %v19_v56  ;;  %113 = vmatpush.msra.mxu1 %v20_v57  ;;  %v671_v23 = vld [vmem:[%s1647_s2 + $0x358] sm:$0xff]  ;;  %v664_v24 = vld [vmem:[%s1647_s2 + $0x320] sm:$0xff]  ;;  %v665_v25 = vld [vmem:[%s1647_s2 + $0x328] sm:$0xff] }
  0x1f   :  { %133 = vmatpush.msra.mxu2 %v21_v58  ;;  %153 = vmatpush.msra.mxu3 %v22_v59  ;;  %v666_v26 = vld [vmem:[%s1647_s2 + $0x330] sm:$0xff]  ;;  %v667_v27 = vld [vmem:[%s1647_s2 + $0x338] sm:$0xff]  ;;  %v660_v28 = vld [vmem:[%s1647_s2 + $0x300] sm:$0xff] }
  0x20   :  { %94 = vmatpush.msra.mxu0 %v15_v60  ;;  %114 = vmatpush.msra.mxu1 %v16_v61  ;;  %v661_v29 = vld [vmem:[%s1647_s2 + $0x308] sm:$0xff]  ;;  %v662_v30 = vld [vmem:[%s1647_s2 + $0x310] sm:$0xff]  ;;  %v663_v31 = vld [vmem:[%s1647_s2 + $0x318] sm:$0xff] }
  0x21   :  { %134 = vmatpush.msra.mxu2 %v17_v62  ;;  %154 = vmatpush.msra.mxu3 %v18_v63  ;;  %v656_v32 = vld [vmem:[%s1647_s2 + $0x2e0] sm:$0xff]  ;;  %v657_v33 = vld [vmem:[%s1647_s2 + $0x2e8] sm:$0xff]  ;;  %v658_v34 = vld [vmem:[%s1647_s2 + $0x2f0] sm:$0xff] }
  0x22   :  { %224 = vmatpush.msrb.mxu0 %v688_v0  ;;  %244 = vmatpush.msrb.mxu1 %v689_v1  ;;  %v659_v35 = vld [vmem:[%s1647_s2 + $0x2f8] sm:$0xff]  ;;  %v652_v36 = vld [vmem:[%s1647_s2 + $0x2c0] sm:$0xff]  ;;  %v653_v37 = vld [vmem:[%s1647_s2 + $0x2c8] sm:$0xff] }
  0x23   :  { %264 = vmatpush.msrb.mxu2 %v690_v2  ;;  %284 = vmatpush.msrb.mxu3 %v691_v3  ;;  %v654_v38 = vld [vmem:[%s1647_s2 + $0x2d0] sm:$0xff]  ;;  %v655_v39 = vld [vmem:[%s1647_s2 + $0x2d8] sm:$0xff]  ;;  %v648_v40 = vld [vmem:[%s1647_s2 + $0x2a0] sm:$0xff] }
  0x24   :  { %225 = vmatpush.msrb.mxu0 %v684_v4  ;;  %245 = vmatpush.msrb.mxu1 %v685_v5  ;;  %v649_v41 = vld [vmem:[%s1647_s2 + $0x2a8] sm:$0xff]  ;;  %v650_v42 = vld [vmem:[%s1647_s2 + $0x2b0] sm:$0xff]  ;;  %v651_v43 = vld [vmem:[%s1647_s2 + $0x2b8] sm:$0xff] }
  0x25   :  { %265 = vmatpush.msrb.mxu2 %v686_v6  ;;  %285 = vmatpush.msrb.mxu3 %v687_v7  ;;  %v644_v44 = vld [vmem:[%s1647_s2 + $0x280] sm:$0xff]  ;;  %v645_v45 = vld [vmem:[%s1647_s2 + $0x288] sm:$0xff]  ;;  %v646_v46 = vld [vmem:[%s1647_s2 + $0x290] sm:$0xff] }
  0x26   :  { %226 = vmatpush.msrb.mxu0 %v680_v8  ;;  %246 = vmatpush.msrb.mxu1 %v681_v9  ;;  %v647_v47 = vld [vmem:[%s1647_s2 + $0x298] sm:$0xff]  ;;  %v1182_v48 = vld [vmem:[%s1648_s0] sm:$0xff]  ;;  %v641_v50 = vld [vmem:[%s1647_s2 + $0x268] sm:$0xff] }
  0x27   :  { %266 = vmatpush.msrb.mxu2 %v682_v10  ;;  %286 = vmatpush.msrb.mxu3 %v683_v11  ;;  %v640_v49 = vld [vmem:[%s1647_s2 + $0x260] sm:$0xff]  ;;  %v642_v51 = vld [vmem:[%s1647_s2 + $0x270] sm:$0xff]  ;;  %v643_v52 = vld [vmem:[%s1647_s2 + $0x278] sm:$0xff] }
  0x28   :  { %227 = vmatpush.msrb.mxu0 %v676_v12  ;;  %247 = vmatpush.msrb.mxu1 %v677_v13  ;;  %v636_v53 = vld [vmem:[%s1647_s2 + $0x240] sm:$0xff]  ;;  %v637_v54 = vld [vmem:[%s1647_s2 + $0x248] sm:$0xff]  ;;  %v638_v55 = vld [vmem:[%s1647_s2 + $0x250] sm:$0xff] }
  0x29   :  { %267 = vmatpush.msrb.mxu2 %v678_v14  ;;  %287 = vmatpush.msrb.mxu3 %v679_v15  ;;  %v639_v56 = vld [vmem:[%s1647_s2 + $0x258] sm:$0xff]  ;;  %v632_v57 = vld [vmem:[%s1647_s2 + $0x220] sm:$0xff]  ;;  %v633_v58 = vld [vmem:[%s1647_s2 + $0x228] sm:$0xff] }
  0x2a   :  { %228 = vmatpush.msrb.mxu0 %v672_v16  ;;  %248 = vmatpush.msrb.mxu1 %v673_v17  ;;  %v634_v59 = vld [vmem:[%s1647_s2 + $0x230] sm:$0xff]  ;;  %v635_v60 = vld [vmem:[%s1647_s2 + $0x238] sm:$0xff]  ;;  %v628_v61 = vld [vmem:[%s1647_s2 + $0x200] sm:$0xff] }
  0x2b   :  { %268 = vmatpush.msrb.mxu2 %v674_v18  ;;  %288 = vmatpush.msrb.mxu3 %v675_v19  ;;  %v629_v62 = vld [vmem:[%s1647_s2 + $0x208] sm:$0xff]  ;;  %v630_v63 = vld [vmem:[%s1647_s2 + $0x210] sm:$0xff]  ;;  %v631_v0 = vld [vmem:[%s1647_s2 + $0x218] sm:$0xff] }
  0x2c   :  { %229 = vmatpush.msrb.mxu0 %v668_v20  ;;  %249 = vmatpush.msrb.mxu1 %v669_v21  ;;  %v752_v1 = vld [vmem:[%s1647_s2 + $0x5e0] sm:$0xff]  ;;  %v753_v2 = vld [vmem:[%s1647_s2 + $0x5e8] sm:$0xff]  ;;  %v754_v3 = vld [vmem:[%s1647_s2 + $0x5f0] sm:$0xff] }
  0x2d   :  { %269 = vmatpush.msrb.mxu2 %v670_v22  ;;  %289 = vmatpush.msrb.mxu3 %v671_v23  ;;  %v755_v4 = vld [vmem:[%s1647_s2 + $0x5f8] sm:$0xff]  ;;  %v748_v5 = vld [vmem:[%s1647_s2 + $0x5c0] sm:$0xff]  ;;  %v749_v6 = vld [vmem:[%s1647_s2 + $0x5c8] sm:$0xff] }
  0x2e   :  { %230 = vmatpush.msrb.mxu0 %v664_v24  ;;  %250 = vmatpush.msrb.mxu1 %v665_v25  ;;  %v750_v7 = vld [vmem:[%s1647_s2 + $0x5d0] sm:$0xff]  ;;  %v751_v8 = vld [vmem:[%s1647_s2 + $0x5d8] sm:$0xff]  ;;  %v744_v9 = vld [vmem:[%s1647_s2 + $0x5a0] sm:$0xff] }
  0x2f   :  { %270 = vmatpush.msrb.mxu2 %v666_v26  ;;  %290 = vmatpush.msrb.mxu3 %v667_v27  ;;  %v745_v10 = vld [vmem:[%s1647_s2 + $0x5a8] sm:$0xff]  ;;  %v746_v11 = vld [vmem:[%s1647_s2 + $0x5b0] sm:$0xff]  ;;  %v747_v12 = vld [vmem:[%s1647_s2 + $0x5b8] sm:$0xff] }
  0x30   :  { %231 = vmatpush.msrb.mxu0 %v660_v28  ;;  %251 = vmatpush.msrb.mxu1 %v661_v29  ;;  %v740_v13 = vld [vmem:[%s1647_s2 + $0x580] sm:$0xff]  ;;  %v741_v14 = vld [vmem:[%s1647_s2 + $0x588] sm:$0xff]  ;;  %v742_v15 = vld [vmem:[%s1647_s2 + $0x590] sm:$0xff] }
  0x31   :  { %271 = vmatpush.msrb.mxu2 %v662_v30  ;;  %291 = vmatpush.msrb.mxu3 %v663_v31  ;;  %v743_v16 = vld [vmem:[%s1647_s2 + $0x598] sm:$0xff]  ;;  %v736_v17 = vld [vmem:[%s1647_s2 + $0x560] sm:$0xff]  ;;  %v737_v18 = vld [vmem:[%s1647_s2 + $0x568] sm:$0xff] }
  0x32   :  { %232 = vmatpush.msrb.mxu0 %v656_v32  ;;  %252 = vmatpush.msrb.mxu1 %v657_v33  ;;  %v738_v19 = vld [vmem:[%s1647_s2 + $0x570] sm:$0xff]  ;;  %v739_v20 = vld [vmem:[%s1647_s2 + $0x578] sm:$0xff]  ;;  %v732_v21 = vld [vmem:[%s1647_s2 + $0x540] sm:$0xff] }
  0x33   :  { %272 = vmatpush.msrb.mxu2 %v658_v34  ;;  %292 = vmatpush.msrb.mxu3 %v659_v35  ;;  %v733_v22 = vld [vmem:[%s1647_s2 + $0x548] sm:$0xff]  ;;  %v734_v23 = vld [vmem:[%s1647_s2 + $0x550] sm:$0xff]  ;;  %v735_v24 = vld [vmem:[%s1647_s2 + $0x558] sm:$0xff] }
  0x34   :  { %233 = vmatpush.msrb.mxu0 %v652_v36  ;;  %253 = vmatpush.msrb.mxu1 %v653_v37  ;;  %v728_v25 = vld [vmem:[%s1647_s2 + $0x520] sm:$0xff]  ;;  %v729_v26 = vld [vmem:[%s1647_s2 + $0x528] sm:$0xff]  ;;  %v730_v27 = vld [vmem:[%s1647_s2 + $0x530] sm:$0xff] }
  0x35   :  { %273 = vmatpush.msrb.mxu2 %v654_v38  ;;  %293 = vmatpush.msrb.mxu3 %v655_v39  ;;  %v731_v28 = vld [vmem:[%s1647_s2 + $0x538] sm:$0xff]  ;;  %v724_v29 = vld [vmem:[%s1647_s2 + $0x500] sm:$0xff]  ;;  %v725_v30 = vld [vmem:[%s1647_s2 + $0x508] sm:$0xff] }
  0x36   :  { %234 = vmatpush.msrb.mxu0 %v648_v40  ;;  %254 = vmatpush.msrb.mxu1 %v649_v41  ;;  %v726_v31 = vld [vmem:[%s1647_s2 + $0x510] sm:$0xff]  ;;  %v727_v32 = vld [vmem:[%s1647_s2 + $0x518] sm:$0xff]  ;;  %v720_v33 = vld [vmem:[%s1647_s2 + $0x4e0] sm:$0xff] }
  0x37   :  { %274 = vmatpush.msrb.mxu2 %v650_v42  ;;  %294 = vmatpush.msrb.mxu3 %v651_v43  ;;  %v721_v34 = vld [vmem:[%s1647_s2 + $0x4e8] sm:$0xff]  ;;  %v722_v35 = vld [vmem:[%s1647_s2 + $0x4f0] sm:$0xff]  ;;  %v723_v36 = vld [vmem:[%s1647_s2 + $0x4f8] sm:$0xff] }
  0x38   :  { %235 = vmatpush.msrb.mxu0 %v644_v44  ;;  %255 = vmatpush.msrb.mxu1 %v645_v45  ;;  %v716_v37 = vld [vmem:[%s1647_s2 + $0x4c0] sm:$0xff]  ;;  %v717_v38 = vld [vmem:[%s1647_s2 + $0x4c8] sm:$0xff]  ;;  %v718_v39 = vld [vmem:[%s1647_s2 + $0x4d0] sm:$0xff] }
  0x39   :  { %275 = vmatpush.msrb.mxu2 %v646_v46  ;;  %295 = vmatpush.msrb.mxu3 %v647_v47  ;;  %v719_v40 = vld [vmem:[%s1647_s2 + $0x4d8] sm:$0xff]  ;;  %v712_v41 = vld [vmem:[%s1647_s2 + $0x4a0] sm:$0xff]  ;;  %v713_v42 = vld [vmem:[%s1647_s2 + $0x4a8] sm:$0xff] }
  0x3a   :  { %135 = vmatmul.f32.vlgmr.msra.gmra.mxu2 %v1182_v48  ;;  %155 = vmatmul.f32.vlgmr.msra.gmra.mxu3 %v1182_v48  ;;  %v714_v43 = vld [vmem:[%s1647_s2 + $0x4b0] sm:$0xff]  ;;  %v715_v44 = vld [vmem:[%s1647_s2 + $0x4b8] sm:$0xff]  ;;  %v708_v45 = vld [vmem:[%s1647_s2 + $0x480] sm:$0xff] }
  0x3b   :  { %236 = vmatpush.msrb.mxu0 %v640_v49  ;;  %256 = vmatpush.msrb.mxu1 %v641_v50  ;;  %v709_v46 = vld [vmem:[%s1647_s2 + $0x488] sm:$0xff]  ;;  %v710_v47 = vld [vmem:[%s1647_s2 + $0x490] sm:$0xff]  ;;  %v711_v49 = vld [vmem:[%s1647_s2 + $0x498] sm:$0xff] }
  0x3c   :  { %276 = vmatpush.msrb.mxu2 %v642_v51  ;;  %296 = vmatpush.msrb.mxu3 %v643_v52  ;;  %v704_v50 = vld [vmem:[%s1647_s2 + $0x460] sm:$0xff]  ;;  %v705_v51 = vld [vmem:[%s1647_s2 + $0x468] sm:$0xff]  ;;  %v706_v52 = vld [vmem:[%s1647_s2 + $0x470] sm:$0xff] }
  0x3d   :  { %237 = vmatpush.msrb.mxu0 %v636_v53  ;;  %257 = vmatpush.msrb.mxu1 %v637_v54  ;;  %v707_v53 = vld [vmem:[%s1647_s2 + $0x478] sm:$0xff]  ;;  %v700_v54 = vld [vmem:[%s1647_s2 + $0x440] sm:$0xff] }
  0x3e   :  { %277 = vmatpush.msrb.mxu2 %v638_v55  ;;  %297 = vmatpush.msrb.mxu3 %v639_v56  ;;  %v701_v55 = vld [vmem:[%s1647_s2 + $0x448] sm:$0xff]  ;;  %v702_v56 = vld [vmem:[%s1647_s2 + $0x450] sm:$0xff] }
  0x3f   :  { %238 = vmatpush.msrb.mxu0 %v632_v57  ;;  %258 = vmatpush.msrb.mxu1 %v633_v58  ;;  %v703_v57 = vld [vmem:[%s1647_s2 + $0x458] sm:$0xff]  ;;  %v696_v58 = vld [vmem:[%s1647_s2 + $0x420] sm:$0xff] }
  0x40   :  { %278 = vmatpush.msrb.mxu2 %v634_v59  ;;  %298 = vmatpush.msrb.mxu3 %v635_v60  ;;  %v697_v59 = vld [vmem:[%s1647_s2 + $0x428] sm:$0xff]  ;;  %v698_v60 = vld [vmem:[%s1647_s2 + $0x430] sm:$0xff] }
  0x41   :  { %95 = vmatmul.f32.vlgmr.msra.gmra.mxu0 %v1182_v48  ;;  %115 = vmatmul.f32.vlgmr.msra.gmra.mxu1 %v1182_v48 }
  0x42   :  { %239 = vmatpush.msrb.mxu0 %v628_v61  ;;  %259 = vmatpush.msrb.mxu1 %v629_v62  ;;  %v699_v61 = vld [vmem:[%s1647_s2 + $0x438] sm:$0xff]  ;;  %v692_v62 = vld [vmem:[%s1647_s2 + $0x400] sm:$0xff] }
  0x43   :  { %279 = vmatpush.msrb.mxu2 %v630_v63  ;;  %299 = vmatpush.msrb.mxu3 %v631_v0  ;;  %v693_v63 = vld [vmem:[%s1647_s2 + $0x408] sm:$0xff]  ;;  %v694_v0 = vld [vmem:[%s1647_s2 + $0x410] sm:$0xff] }
  0x44   :  { %280 = vmatmul.f32.vlgmr.msrb.gmra.mxu2 %v1182_v48  ;;  %300 = vmatmul.f32.vlgmr.msrb.gmra.mxu3 %v1182_v48 }
  0x45   :  { %373 = vmatpush.msra.mxu0 %v752_v1  ;;  %393 = vmatpush.msra.mxu1 %v753_v2  ;;  %v695_v1 = vld [vmem:[%s1647_s2 + $0x418] sm:$0xff]  ;;  %v816_v2 = vld [vmem:[%s1647_s2 + $0x7e0] sm:$0xff] }
  0x46   :  { %413 = vmatpush.msra.mxu2 %v754_v3  ;;  %433 = vmatpush.msra.mxu3 %v755_v4  ;;  %v817_v3 = vld [vmem:[%s1647_s2 + $0x7e8] sm:$0xff]  ;;  %v818_v4 = vld [vmem:[%s1647_s2 + $0x7f0] sm:$0xff] }
  0x47   :  { %374 = vmatpush.msra.mxu0 %v748_v5  ;;  %394 = vmatpush.msra.mxu1 %v749_v6  ;;  %v819_v5 = vld [vmem:[%s1647_s2 + $0x7f8] sm:$0xff]  ;;  %v812_v6 = vld [vmem:[%s1647_s2 + $0x7c0] sm:$0xff] }
  0x48   :  { %414 = vmatpush.msra.mxu2 %v750_v7  ;;  %434 = vmatpush.msra.mxu3 %v751_v8  ;;  %v813_v7 = vld [vmem:[%s1647_s2 + $0x7c8] sm:$0xff]  ;;  %v814_v8 = vld [vmem:[%s1647_s2 + $0x7d0] sm:$0xff] }
  0x49   :  { %375 = vmatpush.msra.mxu0 %v744_v9  ;;  %395 = vmatpush.msra.mxu1 %v745_v10  ;;  %v815_v9 = vld [vmem:[%s1647_s2 + $0x7d8] sm:$0xff]  ;;  %v808_v10 = vld [vmem:[%s1647_s2 + $0x7a0] sm:$0xff] }
  0x4a   :  { %415 = vmatpush.msra.mxu2 %v746_v11  ;;  %435 = vmatpush.msra.mxu3 %v747_v12  ;;  %v809_v11 = vld [vmem:[%s1647_s2 + $0x7a8] sm:$0xff]  ;;  %v810_v12 = vld [vmem:[%s1647_s2 + $0x7b0] sm:$0xff] }
  0x4b   :  { %240 = vmatmul.f32.vlgmr.msrb.gmra.mxu0 %v1182_v48  ;;  %260 = vmatmul.f32.vlgmr.msrb.gmra.mxu1 %v1182_v48 }
  0x4c   :  { %376 = vmatpush.msra.mxu0 %v740_v13  ;;  %396 = vmatpush.msra.mxu1 %v741_v14  ;;  %v811_v13 = vld [vmem:[%s1647_s2 + $0x7b8] sm:$0xff]  ;;  %v804_v14 = vld [vmem:[%s1647_s2 + $0x780] sm:$0xff] }
  0x4d   :  { %416 = vmatpush.msra.mxu2 %v742_v15  ;;  %436 = vmatpush.msra.mxu3 %v743_v16  ;;  %v805_v15 = vld [vmem:[%s1647_s2 + $0x788] sm:$0xff]  ;;  %v806_v16 = vld [vmem:[%s1647_s2 + $0x790] sm:$0xff] }
  0x4e   :  { %377 = vmatpush.msra.mxu0 %v736_v17  ;;  %397 = vmatpush.msra.mxu1 %v737_v18  ;;  %v807_v17 = vld [vmem:[%s1647_s2 + $0x798] sm:$0xff]  ;;  %v800_v18 = vld [vmem:[%s1647_s2 + $0x760] sm:$0xff] }
  0x4f   :  { %417 = vmatpush.msra.mxu2 %v738_v19  ;;  %437 = vmatpush.msra.mxu3 %v739_v20  ;;  %v801_v19 = vld [vmem:[%s1647_s2 + $0x768] sm:$0xff]  ;;  %v802_v20 = vld [vmem:[%s1647_s2 + $0x770] sm:$0xff] }
  0x50   :  { %378 = vmatpush.msra.mxu0 %v732_v21  ;;  %398 = vmatpush.msra.mxu1 %v733_v22  ;;  %v803_v21 = vld [vmem:[%s1647_s2 + $0x778] sm:$0xff]  ;;  %v796_v22 = vld [vmem:[%s1647_s2 + $0x740] sm:$0xff] }
  0x51   :  { %418 = vmatpush.msra.mxu2 %v734_v23  ;;  %438 = vmatpush.msra.mxu3 %v735_v24  ;;  %v797_v23 = vld [vmem:[%s1647_s2 + $0x748] sm:$0xff]  ;;  %v798_v24 = vld [vmem:[%s1647_s2 + $0x750] sm:$0xff] }
  0x52   :  { %379 = vmatpush.msra.mxu0 %v728_v25  ;;  %399 = vmatpush.msra.mxu1 %v729_v26  ;;  %v799_v25 = vld [vmem:[%s1647_s2 + $0x758] sm:$0xff]  ;;  %v792_v26 = vld [vmem:[%s1647_s2 + $0x720] sm:$0xff] }
  0x53   :  { %419 = vmatpush.msra.mxu2 %v730_v27  ;;  %439 = vmatpush.msra.mxu3 %v731_v28  ;;  %v793_v27 = vld [vmem:[%s1647_s2 + $0x728] sm:$0xff]  ;;  %v794_v28 = vld [vmem:[%s1647_s2 + $0x730] sm:$0xff] }
  0x54   :  { %380 = vmatpush.msra.mxu0 %v724_v29  ;;  %400 = vmatpush.msra.mxu1 %v725_v30  ;;  %v795_v29 = vld [vmem:[%s1647_s2 + $0x738] sm:$0xff]  ;;  %v788_v30 = vld [vmem:[%s1647_s2 + $0x700] sm:$0xff] }
  0x55   :  { %420 = vmatpush.msra.mxu2 %v726_v31  ;;  %440 = vmatpush.msra.mxu3 %v727_v32  ;;  %v789_v31 = vld [vmem:[%s1647_s2 + $0x708] sm:$0xff]  ;;  %v790_v32 = vld [vmem:[%s1647_s2 + $0x710] sm:$0xff] }
  0x56   :  { %381 = vmatpush.msra.mxu0 %v720_v33  ;;  %401 = vmatpush.msra.mxu1 %v721_v34  ;;  %v791_v33 = vld [vmem:[%s1647_s2 + $0x718] sm:$0xff]  ;;  %v784_v34 = vld [vmem:[%s1647_s2 + $0x6e0] sm:$0xff] }
  0x57   :  { %421 = vmatpush.msra.mxu2 %v722_v35  ;;  %441 = vmatpush.msra.mxu3 %v723_v36  ;;  %v785_v35 = vld [vmem:[%s1647_s2 + $0x6e8] sm:$0xff]  ;;  %v786_v36 = vld [vmem:[%s1647_s2 + $0x6f0] sm:$0xff] }
  0x58   :  { %382 = vmatpush.msra.mxu0 %v716_v37  ;;  %402 = vmatpush.msra.mxu1 %v717_v38  ;;  %v787_v37 = vld [vmem:[%s1647_s2 + $0x6f8] sm:$0xff]  ;;  %v780_v38 = vld [vmem:[%s1647_s2 + $0x6c0] sm:$0xff] }
  0x59   :  { %422 = vmatpush.msra.mxu2 %v718_v39  ;;  %442 = vmatpush.msra.mxu3 %v719_v40  ;;  %v781_v39 = vld [vmem:[%s1647_s2 + $0x6c8] sm:$0xff]  ;;  %v782_v40 = vld [vmem:[%s1647_s2 + $0x6d0] sm:$0xff] }
  0x5a   :  { %383 = vmatpush.msra.mxu0 %v712_v41  ;;  %403 = vmatpush.msra.mxu1 %v713_v42  ;;  %v783_v41 = vld [vmem:[%s1647_s2 + $0x6d8] sm:$0xff]  ;;  %v776_v42 = vld [vmem:[%s1647_s2 + $0x6a0] sm:$0xff] }
  0x5b   :  { %423 = vmatpush.msra.mxu2 %v714_v43  ;;  %443 = vmatpush.msra.mxu3 %v715_v44  ;;  %v777_v43 = vld [vmem:[%s1647_s2 + $0x6a8] sm:$0xff]  ;;  %v778_v44 = vld [vmem:[%s1647_s2 + $0x6b0] sm:$0xff] }
  0x5c   :  { %384 = vmatpush.msra.mxu0 %v708_v45  ;;  %404 = vmatpush.msra.mxu1 %v709_v46  ;;  %v779_v45 = vld [vmem:[%s1647_s2 + $0x6b8] sm:$0xff]  ;;  %v772_v46 = vld [vmem:[%s1647_s2 + $0x680] sm:$0xff] }
  0x5d   :  { %424 = vmatpush.msra.mxu2 %v710_v47  ;;  %444 = vmatpush.msra.mxu3 %v711_v49  ;;  %v773_v47 = vld [vmem:[%s1647_s2 + $0x688] sm:$0xff]  ;;  %v774_v49 = vld [vmem:[%s1647_s2 + $0x690] sm:$0xff] }
  0x5e   :  { %385 = vmatpush.msra.mxu0 %v704_v50  ;;  %405 = vmatpush.msra.mxu1 %v705_v51  ;;  %v775_v50 = vld [vmem:[%s1647_s2 + $0x698] sm:$0xff]  ;;  %v768_v51 = vld [vmem:[%s1647_s2 + $0x660] sm:$0xff] }
  0x5f   :  { %425 = vmatpush.msra.mxu2 %v706_v52  ;;  %445 = vmatpush.msra.mxu3 %v707_v53  ;;  %v769_v52 = vld [vmem:[%s1647_s2 + $0x668] sm:$0xff]  ;;  %v770_v53 = vld [vmem:[%s1647_s2 + $0x670] sm:$0xff] }
  0x60   :  { %386 = vmatpush.msra.mxu0 %v700_v54  ;;  %406 = vmatpush.msra.mxu1 %v701_v55  ;;  %v771_v54 = vld [vmem:[%s1647_s2 + $0x678] sm:$0xff]  ;;  %v764_v55 = vld [vmem:[%s1647_s2 + $0x640] sm:$0xff] }
  0x61   :  { %426 = vmatpush.msra.mxu2 %v702_v56  ;;  %446 = vmatpush.msra.mxu3 %v703_v57  ;;  %v765_v56 = vld [vmem:[%s1647_s2 + $0x648] sm:$0xff]  ;;  %v766_v57 = vld [vmem:[%s1647_s2 + $0x650] sm:$0xff] }
  0x62   :  { %387 = vmatpush.msra.mxu0 %v696_v58  ;;  %407 = vmatpush.msra.mxu1 %v697_v59  ;;  %v767_v58 = vld [vmem:[%s1647_s2 + $0x658] sm:$0xff]  ;;  %v760_v59 = vld [vmem:[%s1647_s2 + $0x620] sm:$0xff] }
  0x63   :  { %427 = vmatpush.msra.mxu2 %v698_v60  ;;  %447 = vmatpush.msra.mxu3 %v699_v61  ;;  %v761_v60 = vld [vmem:[%s1647_s2 + $0x628] sm:$0xff]  ;;  %v762_v61 = vld [vmem:[%s1647_s2 + $0x630] sm:$0xff] }
  0x64   :  { %388 = vmatpush.msra.mxu0 %v692_v62  ;;  %408 = vmatpush.msra.mxu1 %v693_v63  ;;  %v763_v62 = vld [vmem:[%s1647_s2 + $0x638] sm:$0xff]  ;;  %v756_v63 = vld [vmem:[%s1647_s2 + $0x600] sm:$0xff] }
  0x65   :  { %428 = vmatpush.msra.mxu2 %v694_v0  ;;  %448 = vmatpush.msra.mxu3 %v695_v1  ;;  %v757_v0 = vld [vmem:[%s1647_s2 + $0x608] sm:$0xff]  ;;  %v758_v1 = vld [vmem:[%s1647_s2 + $0x610] sm:$0xff] }
  0x66   :  { %389 = vmatmul.f32.vlgmr.msra.gmra.mxu0 %v1182_v48  ;;  %409 = vmatmul.f32.vlgmr.msra.gmra.mxu1 %v1182_v48 }
  0x67   :  { %429 = vmatmul.f32.vlgmr.msra.gmra.mxu2 %v1182_v48  ;;  %449 = vmatmul.f32.vlgmr.msra.gmra.mxu3 %v1182_v48 }
  0x68   :  { %522 = vmatpush.msrb.mxu0 %v816_v2  ;;  %542 = vmatpush.msrb.mxu1 %v817_v3  ;;  %v759_v2 = vld [vmem:[%s1647_s2 + $0x618] sm:$0xff]  ;;  %v606_v3 = vld [vmem:[%s1649_s1] sm:$0xff] }
  0x69   :  { %562 = vmatpush.msrb.mxu2 %v818_v4  ;;  %582 = vmatpush.msrb.mxu3 %v819_v5  ;;  %v822_v4 = vmov 0  }
  0x6a   :  { %523 = vmatpush.msrb.mxu0 %v812_v6  ;;  %543 = vmatpush.msrb.mxu1 %v813_v7 }
  0x6b   :  { %563 = vmatpush.msrb.mxu2 %v814_v8  ;;  %583 = vmatpush.msrb.mxu3 %v815_v9 }
  0x6c   :  { %524 = vmatpush.msrb.mxu0 %v808_v10  ;;  %544 = vmatpush.msrb.mxu1 %v809_v11 }
  0x6d   :  { %564 = vmatpush.msrb.mxu2 %v810_v12  ;;  %584 = vmatpush.msrb.mxu3 %v811_v13 }
  0x6e   :  { %525 = vmatpush.msrb.mxu0 %v804_v14  ;;  %545 = vmatpush.msrb.mxu1 %v805_v15 }
  0x6f   :  { %565 = vmatpush.msrb.mxu2 %v806_v16  ;;  %585 = vmatpush.msrb.mxu3 %v807_v17 }
  0x70   :  { %526 = vmatpush.msrb.mxu0 %v800_v18  ;;  %546 = vmatpush.msrb.mxu1 %v801_v19 }
  0x71   :  { %566 = vmatpush.msrb.mxu2 %v802_v20  ;;  %586 = vmatpush.msrb.mxu3 %v803_v21 }
  0x72   :  { %527 = vmatpush.msrb.mxu0 %v796_v22  ;;  %547 = vmatpush.msrb.mxu1 %v797_v23 }
  0x73   :  { %567 = vmatpush.msrb.mxu2 %v798_v24  ;;  %587 = vmatpush.msrb.mxu3 %v799_v25 }
  0x74   :  { %528 = vmatpush.msrb.mxu0 %v792_v26  ;;  %548 = vmatpush.msrb.mxu1 %v793_v27 }
  0x75   :  { %568 = vmatpush.msrb.mxu2 %v794_v28  ;;  %588 = vmatpush.msrb.mxu3 %v795_v29 }
  0x76   :  { %529 = vmatpush.msrb.mxu0 %v788_v30  ;;  %549 = vmatpush.msrb.mxu1 %v789_v31 }
  0x77   :  { %569 = vmatpush.msrb.mxu2 %v790_v32  ;;  %589 = vmatpush.msrb.mxu3 %v791_v33 }
  0x78   :  { %530 = vmatpush.msrb.mxu0 %v784_v34  ;;  %550 = vmatpush.msrb.mxu1 %v785_v35 }
  0x79   :  { %570 = vmatpush.msrb.mxu2 %v786_v36  ;;  %590 = vmatpush.msrb.mxu3 %v787_v37 }
  0x7a   :  { %531 = vmatpush.msrb.mxu0 %v780_v38  ;;  %551 = vmatpush.msrb.mxu1 %v781_v39 }
  0x7b   :  { %571 = vmatpush.msrb.mxu2 %v782_v40  ;;  %591 = vmatpush.msrb.mxu3 %v783_v41 }
  0x7c   :  { %532 = vmatpush.msrb.mxu0 %v776_v42  ;;  %552 = vmatpush.msrb.mxu1 %v777_v43 }
  0x7d   :  { %572 = vmatpush.msrb.mxu2 %v778_v44  ;;  %592 = vmatpush.msrb.mxu3 %v779_v45 }
  0x7e   :  { %533 = vmatpush.msrb.mxu0 %v772_v46  ;;  %553 = vmatpush.msrb.mxu1 %v773_v47 }
  0x7f   :  { %573 = vmatpush.msrb.mxu2 %v774_v49  ;;  %593 = vmatpush.msrb.mxu3 %v775_v50 }
  0x80   :  { %534 = vmatpush.msrb.mxu0 %v768_v51  ;;  %554 = vmatpush.msrb.mxu1 %v769_v52 }
  0x81   :  { %574 = vmatpush.msrb.mxu2 %v770_v53  ;;  %594 = vmatpush.msrb.mxu3 %v771_v54 }
  0x82   :  { %535 = vmatpush.msrb.mxu0 %v764_v55  ;;  %555 = vmatpush.msrb.mxu1 %v765_v56 }
  0x83   :  { %575 = vmatpush.msrb.mxu2 %v766_v57  ;;  %595 = vmatpush.msrb.mxu3 %v767_v58 }
  0x84   :  { %536 = vmatpush.msrb.mxu0 %v760_v59  ;;  %556 = vmatpush.msrb.mxu1 %v761_v60 }
  0x85   :  { %576 = vmatpush.msrb.mxu2 %v762_v61  ;;  %596 = vmatpush.msrb.mxu3 %v763_v62 }
  0x86   :  { %537 = vmatpush.msrb.mxu0 %v756_v63  ;;  %557 = vmatpush.msrb.mxu1 %v757_v0 }
  0x87   :  { %577 = vmatpush.msrb.mxu2 %v758_v1  ;;  %597 = vmatpush.msrb.mxu3 %v759_v2 }
  0x88   :  { %538 = vmatmul.f32.vlgmr.msrb.gmra.mxu0 %v1182_v48  ;;  %558 = vmatmul.f32.vlgmr.msrb.gmra.mxu1 %v1182_v48 }
  0x89   :  { %578 = vmatmul.f32.vlgmr.msrb.gmra.mxu2 %v1182_v48  ;;  %598 = vmatmul.f32.vlgmr.msrb.gmra.mxu3 %v1182_v48 }
  0x8a   :  { %821 = vset.pattern.permute.xlu0 %v822_v4 }
  0x8b   :  { %609 = vperm.xlu0 %821, %v606_v3  }
  0xbd   :  { %v136_v7 = vpop.f32.mrf.mxu2  ;;  %v156_v8 = vpop.f32.mrf.mxu3 }
  0xbe   :  { %v96_v5 = vpop.f32.mrf.mxu0  ;;  %v116_v6 = vpop.f32.mrf.mxu1 }
  0xc7   :  { %v281_v11 = vpop.f32.mrf.mxu2  ;;  %v301_v12 = vpop.f32.mrf.mxu3 }
  0xc8   :  { %v241_v9 = vpop.f32.mrf.mxu0  ;;  %v261_v10 = vpop.f32.mrf.mxu1  ;;  %v306_v27 = vmax.f32 %v136_v7, %v281_v11  ;;  %v307_v28 = vmax.f32 %v156_v8, %v301_v12 }
  0xc9   :  { %v304_v15 = vmax.f32 %v96_v5, %v241_v9  ;;  %v305_v16 = vmax.f32 %v116_v6, %v261_v10 }
  0xe3   :  { %v390_v13 = vpop.f32.mrf.mxu0  ;;  %v410_v14 = vpop.f32.mrf.mxu1 }
  0xe4   :  { %v453_v18 = vmax.f32 %v304_v15, %v390_v13  ;;  %v454_v19 = vmax.f32 %v305_v16, %v410_v14 }
  0xea   :  { %v430_v17 = vpop.f32.mrf.mxu2  ;;  %v450_v20 = vpop.f32.mrf.mxu3 }
  0xeb   :  { %v455_v31 = vmax.f32 %v306_v27, %v430_v17  ;;  %v456_v32 = vmax.f32 %v307_v28, %v450_v20 }
  0xfd   :  { %v610_v48 = vpop.permute.xlu0 %609 }
 0x105   :  { %v539_v21 = vpop.f32.mrf.mxu0  ;;  %v559_v22 = vpop.f32.mrf.mxu1 }
 0x106   :  { %v602_v23 = vmax.f32 %v453_v18, %v539_v21  ;;  %v603_v24 = vmax.f32 %v454_v19, %v559_v22 }
 0x108   :  { %v612_v25 = vadd.f32 %v610_v48, %v602_v23  ;;  %v613_v26 = vadd.f32 %v610_v48, %v603_v24 }
 0x10a   :  { %v616_v29 = vmax.f32 %v612_v25, 0.0  ;;  %v617_v30 = vmax.f32 %v613_v26, 0.0 }
 0x10c   :  { %620 = vst [vmem:[%s1650_s3] sm:$0xff] %v616_v29  ;;  %v579_v33 = vpop.f32.mrf.mxu2  ;;  %v599_v34 = vpop.f32.mrf.mxu3 }
 0x10d   :  { %621 = vst [vmem:[%s1650_s3 + $0x8] sm:$0xff] %v617_v30  ;;  %v604_v35 = vmax.f32 %v455_v31, %v579_v33  ;;  %v605_v36 = vmax.f32 %v456_v32, %v599_v34 }
 0x10f   :  { %v614_v37 = vadd.f32 %v610_v48, %v604_v35  ;;  %v615_v38 = vadd.f32 %v610_v48, %v605_v36 }
 0x111   :  { %v618_v39 = vmax.f32 %v614_v37, 0.0  ;;  %v619_v40 = vmax.f32 %v615_v38, 0.0 }
 0x113   :  { %622 = vst [vmem:[%s1650_s3 + $0x10] sm:$0xff] %v618_v39 }
 0x114   :  { %623 = vst [vmem:[%s1650_s3 + $0x18] sm:$0xff] %v619_v40 }

// kernel: lenet_forward.4
= control target key start
LH: loop header
LB: loop body
LE: loop exit
PB: predicated region body
PF: predicated region fallthrough
CT: control target
= control target key end

     0   :  { %s900_s2 = inlined_call_operand.vmem [shape: f32[4,256,128], index: 2, kind: input, shape index: {}]   ;;  %s901_s0 = inlined_call_operand.vmem [shape: f32[16,256], index: 0, kind: input, shape index: {}]   ;;  %s902_s1 = inlined_call_operand.vmem [shape: f32[16,1], index: 1, kind: input, shape index: {}]   ;;  %s903_s3 = inlined_call_operand.vmem [shape: f32[16,128], index: 3, kind: output, shape index: {}]  }
   0x1   :  { %v33_v0 = vld [vmem:[%s900_s2 + $0x78] sm:$0xff]  ;;  %v32_v4 = vld [vmem:[%s900_s2 + $0x70] sm:$0xff]  ;;  %v31_v8 = vld [vmem:[%s900_s2 + $0x68] sm:$0xff] }
   0x2   :  { %v49_v1 = vld [vmem:[%s900_s2 + $0xf8] sm:$0xff]  ;;  %50 = vmatpush.msra.mxu0 %v33_v0  ;;  %v48_v5 = vld [vmem:[%s900_s2 + $0xf0] sm:$0xff]  ;;  %v47_v9 = vld [vmem:[%s900_s2 + $0xe8] sm:$0xff] }
   0x3   :  { %v376_v2 = vld [vmem:[%s900_s2 + $0x178] sm:$0xff]  ;;  %73 = vmatpush.msra.mxu1 %v49_v1  ;;  %v375_v6 = vld [vmem:[%s900_s2 + $0x170] sm:$0xff]  ;;  %v374_v10 = vld [vmem:[%s900_s2 + $0x168] sm:$0xff] }
   0x4   :  { %v392_v3 = vld [vmem:[%s900_s2 + $0x1f8] sm:$0xff]  ;;  %129 = vmatpush.msra.mxu2 %v376_v2  ;;  %v391_v7 = vld [vmem:[%s900_s2 + $0x1f0] sm:$0xff]  ;;  %51 = vmatpush.msra.mxu0 %v32_v4  ;;  %v390_v11 = vld [vmem:[%s900_s2 + $0x1e8] sm:$0xff] }
   0x5   :  { %152 = vmatpush.msra.mxu3 %v392_v3  ;;  %74 = vmatpush.msra.mxu1 %v48_v5  ;;  %v30_v12 = vld [vmem:[%s900_s2 + $0x60] sm:$0xff]  ;;  %v29_v16 = vld [vmem:[%s900_s2 + $0x58] sm:$0xff]  ;;  %v28_v20 = vld [vmem:[%s900_s2 + $0x50] sm:$0xff] }
   0x6   :  { %130 = vmatpush.msra.mxu2 %v375_v6  ;;  %v46_v13 = vld [vmem:[%s900_s2 + $0xe0] sm:$0xff]  ;;  %52 = vmatpush.msra.mxu0 %v31_v8  ;;  %v45_v17 = vld [vmem:[%s900_s2 + $0xd8] sm:$0xff]  ;;  %v44_v21 = vld [vmem:[%s900_s2 + $0xd0] sm:$0xff] }
   0x7   :  { %153 = vmatpush.msra.mxu3 %v391_v7  ;;  %75 = vmatpush.msra.mxu1 %v47_v9  ;;  %v373_v14 = vld [vmem:[%s900_s2 + $0x160] sm:$0xff]  ;;  %v372_v18 = vld [vmem:[%s900_s2 + $0x158] sm:$0xff]  ;;  %v371_v22 = vld [vmem:[%s900_s2 + $0x150] sm:$0xff] }
   0x8   :  { %v389_v15 = vld [vmem:[%s900_s2 + $0x1e0] sm:$0xff]  ;;  %131 = vmatpush.msra.mxu2 %v374_v10  ;;  %53 = vmatpush.msra.mxu0 %v30_v12  ;;  %v388_v19 = vld [vmem:[%s900_s2 + $0x1d8] sm:$0xff]  ;;  %v387_v23 = vld [vmem:[%s900_s2 + $0x1d0] sm:$0xff] }
   0x9   :  { %154 = vmatpush.msra.mxu3 %v390_v11  ;;  %76 = vmatpush.msra.mxu1 %v46_v13  ;;  %v27_v24 = vld [vmem:[%s900_s2 + $0x48] sm:$0xff]  ;;  %v26_v28 = vld [vmem:[%s900_s2 + $0x40] sm:$0xff]  ;;  %v25_v32 = vld [vmem:[%s900_s2 + $0x38] sm:$0xff] }
   0xa   :  { %132 = vmatpush.msra.mxu2 %v373_v14  ;;  %54 = vmatpush.msra.mxu0 %v29_v16  ;;  %v43_v25 = vld [vmem:[%s900_s2 + $0xc8] sm:$0xff]  ;;  %v42_v29 = vld [vmem:[%s900_s2 + $0xc0] sm:$0xff]  ;;  %v41_v33 = vld [vmem:[%s900_s2 + $0xb8] sm:$0xff] }
   0xb   :  { %155 = vmatpush.msra.mxu3 %v389_v15  ;;  %77 = vmatpush.msra.mxu1 %v45_v17  ;;  %v370_v26 = vld [vmem:[%s900_s2 + $0x148] sm:$0xff]  ;;  %v369_v30 = vld [vmem:[%s900_s2 + $0x140] sm:$0xff]  ;;  %v368_v34 = vld [vmem:[%s900_s2 + $0x138] sm:$0xff] }
   0xc   :  { %133 = vmatpush.msra.mxu2 %v372_v18  ;;  %55 = vmatpush.msra.mxu0 %v28_v20  ;;  %v386_v27 = vld [vmem:[%s900_s2 + $0x1c8] sm:$0xff]  ;;  %v385_v31 = vld [vmem:[%s900_s2 + $0x1c0] sm:$0xff]  ;;  %v384_v35 = vld [vmem:[%s900_s2 + $0x1b8] sm:$0xff] }
   0xd   :  { %156 = vmatpush.msra.mxu3 %v388_v19  ;;  %78 = vmatpush.msra.mxu1 %v44_v21  ;;  %v24_v36 = vld [vmem:[%s900_s2 + $0x30] sm:$0xff]  ;;  %v23_v40 = vld [vmem:[%s900_s2 + $0x28] sm:$0xff]  ;;  %v22_v44 = vld [vmem:[%s900_s2 + $0x20] sm:$0xff] }
   0xe   :  { %134 = vmatpush.msra.mxu2 %v371_v22  ;;  %56 = vmatpush.msra.mxu0 %v27_v24  ;;  %v40_v37 = vld [vmem:[%s900_s2 + $0xb0] sm:$0xff]  ;;  %v39_v41 = vld [vmem:[%s900_s2 + $0xa8] sm:$0xff]  ;;  %v38_v45 = vld [vmem:[%s900_s2 + $0xa0] sm:$0xff] }
   0xf   :  { %157 = vmatpush.msra.mxu3 %v387_v23  ;;  %79 = vmatpush.msra.mxu1 %v43_v25  ;;  %v367_v38 = vld [vmem:[%s900_s2 + $0x130] sm:$0xff]  ;;  %v366_v42 = vld [vmem:[%s900_s2 + $0x128] sm:$0xff]  ;;  %v365_v46 = vld [vmem:[%s900_s2 + $0x120] sm:$0xff] }
  0x10   :  { %135 = vmatpush.msra.mxu2 %v370_v26  ;;  %57 = vmatpush.msra.mxu0 %v26_v28  ;;  %v383_v39 = vld [vmem:[%s900_s2 + $0x1b0] sm:$0xff]  ;;  %v382_v43 = vld [vmem:[%s900_s2 + $0x1a8] sm:$0xff]  ;;  %v381_v47 = vld [vmem:[%s900_s2 + $0x1a0] sm:$0xff] }
  0x11   :  { %158 = vmatpush.msra.mxu3 %v386_v27  ;;  %80 = vmatpush.msra.mxu1 %v42_v29  ;;  %v21_v48 = vld [vmem:[%s900_s2 + $0x18] sm:$0xff]  ;;  %v20_v52 = vld [vmem:[%s900_s2 + $0x10] sm:$0xff]  ;;  %v19_v56 = vld [vmem:[%s900_s2 + $0x8] sm:$0xff] }
  0x12   :  { %136 = vmatpush.msra.mxu2 %v369_v30  ;;  %58 = vmatpush.msra.mxu0 %v25_v32  ;;  %v37_v49 = vld [vmem:[%s900_s2 + $0x98] sm:$0xff]  ;;  %v36_v53 = vld [vmem:[%s900_s2 + $0x90] sm:$0xff]  ;;  %v35_v57 = vld [vmem:[%s900_s2 + $0x88] sm:$0xff] }
  0x13   :  { %159 = vmatpush.msra.mxu3 %v385_v31  ;;  %81 = vmatpush.msra.mxu1 %v41_v33  ;;  %v364_v50 = vld [vmem:[%s900_s2 + $0x118] sm:$0xff]  ;;  %v363_v54 = vld [vmem:[%s900_s2 + $0x110] sm:$0xff]  ;;  %v362_v58 = vld [vmem:[%s900_s2 + $0x108] sm:$0xff] }
  0x14   :  { %137 = vmatpush.msra.mxu2 %v368_v34  ;;  %59 = vmatpush.msra.mxu0 %v24_v36  ;;  %v380_v51 = vld [vmem:[%s900_s2 + $0x198] sm:$0xff]  ;;  %v379_v55 = vld [vmem:[%s900_s2 + $0x190] sm:$0xff]  ;;  %v378_v59 = vld [vmem:[%s900_s2 + $0x188] sm:$0xff] }
  0x15   :  { %160 = vmatpush.msra.mxu3 %v384_v35  ;;  %82 = vmatpush.msra.mxu1 %v40_v37  ;;  %v18_v60 = vld [vmem:[%s900_s2] sm:$0xff]  ;;  %v408_v0 = vld [vmem:[%s900_s2 + $0x278] sm:$0xff]  ;;  %v407_v4 = vld [vmem:[%s900_s2 + $0x270] sm:$0xff] }
  0x16   :  { %138 = vmatpush.msra.mxu2 %v367_v38  ;;  %60 = vmatpush.msra.mxu0 %v23_v40  ;;  %v34_v61 = vld [vmem:[%s900_s2 + $0x80] sm:$0xff]  ;;  %v424_v1 = vld [vmem:[%s900_s2 + $0x2f8] sm:$0xff]  ;;  %v423_v5 = vld [vmem:[%s900_s2 + $0x2f0] sm:$0xff] }
  0x17   :  { %161 = vmatpush.msra.mxu3 %v383_v39  ;;  %83 = vmatpush.msra.mxu1 %v39_v41  ;;  %v361_v62 = vld [vmem:[%s900_s2 + $0x100] sm:$0xff]  ;;  %v440_v2 = vld [vmem:[%s900_s2 + $0x378] sm:$0xff]  ;;  %v439_v6 = vld [vmem:[%s900_s2 + $0x370] sm:$0xff] }
  0x18   :  { %139 = vmatpush.msra.mxu2 %v366_v42  ;;  %61 = vmatpush.msra.mxu0 %v22_v44  ;;  %v377_v63 = vld [vmem:[%s900_s2 + $0x180] sm:$0xff]  ;;  %v456_v3 = vld [vmem:[%s900_s2 + $0x3f8] sm:$0xff]  ;;  %v455_v7 = vld [vmem:[%s900_s2 + $0x3f0] sm:$0xff] }
  0x19   :  { %162 = vmatpush.msra.mxu3 %v382_v43  ;;  %84 = vmatpush.msra.mxu1 %v38_v45  ;;  %v406_v8 = vld [vmem:[%s900_s2 + $0x268] sm:$0xff]  ;;  %v405_v12 = vld [vmem:[%s900_s2 + $0x260] sm:$0xff]  ;;  %v404_v16 = vld [vmem:[%s900_s2 + $0x258] sm:$0xff] }
  0x1a   :  { %140 = vmatpush.msra.mxu2 %v365_v46  ;;  %62 = vmatpush.msra.mxu0 %v21_v48  ;;  %v422_v9 = vld [vmem:[%s900_s2 + $0x2e8] sm:$0xff]  ;;  %v421_v13 = vld [vmem:[%s900_s2 + $0x2e0] sm:$0xff]  ;;  %v420_v17 = vld [vmem:[%s900_s2 + $0x2d8] sm:$0xff] }
  0x1b   :  { %163 = vmatpush.msra.mxu3 %v381_v47  ;;  %85 = vmatpush.msra.mxu1 %v37_v49  ;;  %v438_v10 = vld [vmem:[%s900_s2 + $0x368] sm:$0xff]  ;;  %v437_v14 = vld [vmem:[%s900_s2 + $0x360] sm:$0xff]  ;;  %v436_v18 = vld [vmem:[%s900_s2 + $0x358] sm:$0xff] }
  0x1c   :  { %141 = vmatpush.msra.mxu2 %v364_v50  ;;  %63 = vmatpush.msra.mxu0 %v20_v52  ;;  %v454_v11 = vld [vmem:[%s900_s2 + $0x3e8] sm:$0xff]  ;;  %v453_v15 = vld [vmem:[%s900_s2 + $0x3e0] sm:$0xff]  ;;  %v452_v19 = vld [vmem:[%s900_s2 + $0x3d8] sm:$0xff] }
  0x1d   :  { %164 = vmatpush.msra.mxu3 %v380_v51  ;;  %86 = vmatpush.msra.mxu1 %v36_v53  ;;  %v403_v20 = vld [vmem:[%s900_s2 + $0x250] sm:$0xff]  ;;  %v402_v24 = vld [vmem:[%s900_s2 + $0x248] sm:$0xff]  ;;  %v759_v28 = vld [vmem:[%s901_s0] sm:$0xff] }
  0x1e   :  { %142 = vmatpush.msra.mxu2 %v363_v54  ;;  %64 = vmatpush.msra.mxu0 %v19_v56  ;;  %v419_v21 = vld [vmem:[%s900_s2 + $0x2d0] sm:$0xff]  ;;  %v418_v25 = vld [vmem:[%s900_s2 + $0x2c8] sm:$0xff]  ;;  %v401_v30 = vld [vmem:[%s900_s2 + $0x240] sm:$0xff] }
  0x1f   :  { %165 = vmatpush.msra.mxu3 %v379_v55  ;;  %87 = vmatpush.msra.mxu1 %v35_v57  ;;  %v435_v22 = vld [vmem:[%s900_s2 + $0x350] sm:$0xff]  ;;  %v434_v26 = vld [vmem:[%s900_s2 + $0x348] sm:$0xff]  ;;  %v417_v31 = vld [vmem:[%s900_s2 + $0x2c0] sm:$0xff] }
  0x20   :  { %143 = vmatpush.msra.mxu2 %v362_v58  ;;  %65 = vmatpush.msra.mxu0 %v18_v60  ;;  %v451_v23 = vld [vmem:[%s900_s2 + $0x3d0] sm:$0xff]  ;;  %v450_v27 = vld [vmem:[%s900_s2 + $0x3c8] sm:$0xff]  ;;  %v433_v32 = vld [vmem:[%s900_s2 + $0x340] sm:$0xff] }
  0x21   :  { %166 = vmatpush.msra.mxu3 %v378_v59  ;;  %88 = vmatpush.msra.mxu1 %v34_v61  ;;  %v764_v29 = vld [vmem:[%s901_s0 + $0x8] sm:$0xff]  ;;  %v449_v33 = vld [vmem:[%s900_s2 + $0x3c0] sm:$0xff]  ;;  %v400_v34 = vld [vmem:[%s900_s2 + $0x238] sm:$0xff] }
  0x22   :  { %144 = vmatpush.msra.mxu2 %v361_v62  ;;  %210 = vmatpush.msrb.mxu0 %v408_v0  ;;  %v416_v35 = vld [vmem:[%s900_s2 + $0x2b8] sm:$0xff]  ;;  %v399_v38 = vld [vmem:[%s900_s2 + $0x230] sm:$0xff]  ;;  %v398_v42 = vld [vmem:[%s900_s2 + $0x228] sm:$0xff] }
  0x23   :  { %167 = vmatpush.msra.mxu3 %v377_v63  ;;  %233 = vmatpush.msrb.mxu1 %v424_v1  ;;  %v432_v36 = vld [vmem:[%s900_s2 + $0x338] sm:$0xff]  ;;  %v415_v39 = vld [vmem:[%s900_s2 + $0x2b0] sm:$0xff]  ;;  %v414_v43 = vld [vmem:[%s900_s2 + $0x2a8] sm:$0xff] }
  0x24   :  { %291 = vmatpush.msrb.mxu2 %v440_v2  ;;  %211 = vmatpush.msrb.mxu0 %v407_v4  ;;  %v448_v37 = vld [vmem:[%s900_s2 + $0x3b8] sm:$0xff]  ;;  %v431_v40 = vld [vmem:[%s900_s2 + $0x330] sm:$0xff]  ;;  %v430_v44 = vld [vmem:[%s900_s2 + $0x328] sm:$0xff] }
  0x25   :  { %314 = vmatpush.msrb.mxu3 %v456_v3  ;;  %234 = vmatpush.msrb.mxu1 %v423_v5  ;;  %v447_v41 = vld [vmem:[%s900_s2 + $0x3b0] sm:$0xff]  ;;  %v446_v45 = vld [vmem:[%s900_s2 + $0x3a8] sm:$0xff]  ;;  %v17_v47 = vld [vmem:[%s901_s0 + $0x18] sm:$0xff]  ;;  %v459_v5 = vmov 0  }
  0x26   :  { %292 = vmatpush.msrb.mxu2 %v439_v6  ;;  %212 = vmatpush.msrb.mxu0 %v406_v8  ;;  %v16_v46 = vld [vmem:[%s901_s0 + $0x10] sm:$0xff]  ;;  %v397_v48 = vld [vmem:[%s900_s2 + $0x220] sm:$0xff]  ;;  %v396_v52 = vld [vmem:[%s900_s2 + $0x218] sm:$0xff] }
  0x27   :  { %315 = vmatpush.msrb.mxu3 %v455_v7  ;;  %235 = vmatpush.msrb.mxu1 %v422_v9  ;;  %v413_v49 = vld [vmem:[%s900_s2 + $0x2a0] sm:$0xff]  ;;  %v412_v53 = vld [vmem:[%s900_s2 + $0x298] sm:$0xff]  ;;  %v395_v56 = vld [vmem:[%s900_s2 + $0x210] sm:$0xff] }
  0x28   :  { %293 = vmatpush.msrb.mxu2 %v438_v10  ;;  %213 = vmatpush.msrb.mxu0 %v405_v12  ;;  %v429_v50 = vld [vmem:[%s900_s2 + $0x320] sm:$0xff]  ;;  %v428_v54 = vld [vmem:[%s900_s2 + $0x318] sm:$0xff]  ;;  %v411_v57 = vld [vmem:[%s900_s2 + $0x290] sm:$0xff] }
  0x29   :  { %316 = vmatpush.msrb.mxu3 %v454_v11  ;;  %236 = vmatpush.msrb.mxu1 %v421_v13  ;;  %v445_v51 = vld [vmem:[%s900_s2 + $0x3a0] sm:$0xff]  ;;  %v444_v55 = vld [vmem:[%s900_s2 + $0x398] sm:$0xff]  ;;  %v427_v58 = vld [vmem:[%s900_s2 + $0x310] sm:$0xff] }
  0x2a   :  { %294 = vmatpush.msrb.mxu2 %v437_v14  ;;  %214 = vmatpush.msrb.mxu0 %v404_v16  ;;  %v443_v59 = vld [vmem:[%s900_s2 + $0x390] sm:$0xff]  ;;  %v394_v60 = vld [vmem:[%s900_s2 + $0x208] sm:$0xff]  ;;  %v393_v0 = vld [vmem:[%s900_s2 + $0x200] sm:$0xff] }
  0x2b   :  { %317 = vmatpush.msrb.mxu3 %v453_v15  ;;  %237 = vmatpush.msrb.mxu1 %v420_v17  ;;  %v410_v61 = vld [vmem:[%s900_s2 + $0x288] sm:$0xff]  ;;  %v409_v1 = vld [vmem:[%s900_s2 + $0x280] sm:$0xff] }
  0x2c   :  { %295 = vmatpush.msrb.mxu2 %v436_v18  ;;  %215 = vmatpush.msrb.mxu0 %v403_v20  ;;  %v426_v62 = vld [vmem:[%s900_s2 + $0x308] sm:$0xff]  ;;  %v425_v2 = vld [vmem:[%s900_s2 + $0x300] sm:$0xff] }
  0x2d   :  { %318 = vmatpush.msrb.mxu3 %v452_v19  ;;  %238 = vmatpush.msrb.mxu1 %v419_v21  ;;  %v442_v63 = vld [vmem:[%s900_s2 + $0x388] sm:$0xff]  ;;  %v441_v3 = vld [vmem:[%s900_s2 + $0x380] sm:$0xff] }
  0x2e   :  { %296 = vmatpush.msrb.mxu2 %v435_v22  ;;  %216 = vmatpush.msrb.mxu0 %v402_v24  ;;  %v339_v4 = vld [vmem:[%s902_s1] sm:$0xff]  ;;  %v340_v6 = vld [vmem:[%s902_s1 + $0x8] sm:$0xff] }
  0x2f   :  { %319 = vmatpush.msrb.mxu3 %v451_v23  ;;  %239 = vmatpush.msrb.mxu1 %v418_v25 }
  0x30   :  { %297 = vmatpush.msrb.mxu2 %v434_v26  ;;  %168 = vmatmul.f32.vlgmr.msra.gmra.mxu3 %v764_v29 }
  0x31   :  { %320 = vmatpush.msrb.mxu3 %v450_v27  ;;  %145 = vmatmul.f32.vlgmr.msra.gmra.mxu2 %v759_v28 }
  0x32   :  { %217 = vmatpush.msrb.mxu0 %v401_v30  ;;  %240 = vmatpush.msrb.mxu1 %v417_v31 }
  0x33   :  { %298 = vmatpush.msrb.mxu2 %v433_v32  ;;  %321 = vmatpush.msrb.mxu3 %v449_v33 }
  0x34   :  { %66 = vmatmul.f32.vlgmr.msra.gmra.mxu0 %v759_v28  ;;  %89 = vmatmul.f32.vlgmr.msra.gmra.mxu1 %v764_v29 }
  0x35   :  { %218 = vmatpush.msrb.mxu0 %v400_v34  ;;  %241 = vmatpush.msrb.mxu1 %v416_v35 }
  0x36   :  { %299 = vmatpush.msrb.mxu2 %v432_v36  ;;  %322 = vmatpush.msrb.mxu3 %v448_v37 }
  0x37   :  { %219 = vmatpush.msrb.mxu0 %v399_v38  ;;  %242 = vmatpush.msrb.mxu1 %v415_v39 }
  0x38   :  { %300 = vmatpush.msrb.mxu2 %v431_v40  ;;  %323 = vmatpush.msrb.mxu3 %v447_v41 }
  0x39   :  { %220 = vmatpush.msrb.mxu0 %v398_v42  ;;  %243 = vmatpush.msrb.mxu1 %v414_v43 }
  0x3a   :  { %301 = vmatpush.msrb.mxu2 %v430_v44  ;;  %324 = vmatpush.msrb.mxu3 %v446_v45 }
  0x3b   :  { %148 = vmatmul.f32.gmra.mxu2 %v16_v46  ;;  %171 = vmatmul.f32.gmra.mxu3 %v17_v47 }
  0x3c   :  { %221 = vmatpush.msrb.mxu0 %v397_v48  ;;  %244 = vmatpush.msrb.mxu1 %v413_v49 }
  0x3d   :  { %302 = vmatpush.msrb.mxu2 %v429_v50  ;;  %325 = vmatpush.msrb.mxu3 %v445_v51 }
  0x3e   :  { %69 = vmatmul.f32.gmra.mxu0 %v16_v46  ;;  %92 = vmatmul.f32.gmra.mxu1 %v17_v47 }
  0x3f   :  { %222 = vmatpush.msrb.mxu0 %v396_v52  ;;  %245 = vmatpush.msrb.mxu1 %v412_v53 }
  0x40   :  { %303 = vmatpush.msrb.mxu2 %v428_v54  ;;  %326 = vmatpush.msrb.mxu3 %v444_v55 }
  0x41   :  { %223 = vmatpush.msrb.mxu0 %v395_v56  ;;  %246 = vmatpush.msrb.mxu1 %v411_v57 }
  0x42   :  { %304 = vmatpush.msrb.mxu2 %v427_v58  ;;  %327 = vmatpush.msrb.mxu3 %v443_v59 }
  0x43   :  { %224 = vmatpush.msrb.mxu0 %v394_v60  ;;  %247 = vmatpush.msrb.mxu1 %v410_v61 }
  0x44   :  { %305 = vmatpush.msrb.mxu2 %v426_v62  ;;  %328 = vmatpush.msrb.mxu3 %v442_v63 }
  0x45   :  { %225 = vmatpush.msrb.mxu0 %v393_v0  ;;  %248 = vmatpush.msrb.mxu1 %v409_v1 }
  0x46   :  { %306 = vmatpush.msrb.mxu2 %v425_v2  ;;  %329 = vmatpush.msrb.mxu3 %v441_v3 }
  0x47   :  { %226 = vmatmul.f32.vlgmr.msrb.gmra.mxu0 %v759_v28  ;;  %249 = vmatmul.f32.vlgmr.msrb.gmra.mxu1 %v764_v29 }
  0x48   :  { %307 = vmatmul.f32.vlgmr.msrb.gmra.mxu2 %v759_v28  ;;  %330 = vmatmul.f32.vlgmr.msrb.gmra.mxu3 %v764_v29 }
  0x49   :  { %458 = vset.pattern.permute.xlu0 %v459_v5 }
  0x4a   :  { %343 = vperm.xlu0 %458, %v339_v4  }
  0x4f   :  { %229 = vmatmul.f32.gmra.mxu0 %v16_v46  ;;  %252 = vmatmul.f32.gmra.mxu1 %v17_v47 }
  0x50   :  { %310 = vmatmul.f32.gmra.mxu2 %v16_v46  ;;  %333 = vmatmul.f32.gmra.mxu3 %v17_v47 }
  0x52   :  { %348 = vperm.xlu0 %458, %v340_v6  }
  0xb1   :  { %v67_v7 = vpop.f32.mrf.mxu0  ;;  %v90_v8 = vpop.f32.mrf.mxu1 }
  0xb2   :  { %v91_v17 = vadd.f32 %v90_v8, %v67_v7 }
  0xb3   :  { %v169_v10 = vpop.f32.mrf.mxu3 }
  0xb4   :  { %v146_v9 = vpop.f32.mrf.mxu2 }
  0xb5   :  { %v170_v18 = vadd.f32 %v169_v10, %v146_v9 }
  0xb7   :  { %v175_v20 = vmax.f32 %v91_v17, %v170_v18 }
  0xbb   :  { %v70_v11 = vpop.f32.mrf.mxu0  ;;  %v93_v12 = vpop.f32.mrf.mxu1 }
  0xbc   :  { %v344_v24 = vpop.permute.xlu0 %343  ;;  %v94_v28 = vadd.f32 %v93_v12, %v70_v11 }
  0xbe   :  { %v149_v13 = vpop.f32.mrf.mxu2  ;;  %v172_v14 = vpop.f32.mrf.mxu3 }
  0xbf   :  { %v173_v29 = vadd.f32 %v172_v14, %v149_v13 }
  0xc1   :  { %v176_v33 = vmax.f32 %v94_v28, %v173_v29 }
  0xc4   :  { %v227_v15 = vpop.f32.mrf.mxu0  ;;  %v250_v16 = vpop.f32.mrf.mxu1 }
  0xc5   :  { %v251_v19 = vadd.f32 %v250_v16, %v227_v15  ;;  %v349_v40 = vpop.permute.xlu0 %348 }
  0xc7   :  { %v256_v23 = vmax.f32 %v175_v20, %v251_v19 }
  0xcb   :  { %v308_v21 = vpop.f32.mrf.mxu2  ;;  %v331_v22 = vpop.f32.mrf.mxu3 }
  0xcc   :  { %v332_v25 = vadd.f32 %v331_v22, %v308_v21  ;;  %v230_v26 = vpop.f32.mrf.mxu0  ;;  %v253_v27 = vpop.f32.mrf.mxu1 }
  0xcd   :  { %v254_v32 = vadd.f32 %v253_v27, %v230_v26 }
  0xce   :  { %v337_v30 = vmax.f32 %v256_v23, %v332_v25 }
  0xcf   :  { %v257_v37 = vmax.f32 %v176_v33, %v254_v32 }
  0xd0   :  { %v351_v31 = vadd.f32 %v344_v24, %v337_v30 }
  0xd2   :  { %v353_v34 = vmax.f32 %v351_v31, 0.0 }
  0xd3   :  { %v311_v35 = vpop.f32.mrf.mxu2  ;;  %v334_v36 = vpop.f32.mrf.mxu3 }
  0xd4   :  { %355 = vst [vmem:[%s903_s3] sm:$0xff] %v353_v34  ;;  %v335_v38 = vadd.f32 %v334_v36, %v311_v35 }
  0xd6   :  { %v338_v39 = vmax.f32 %v257_v37, %v335_v38 }
  0xd8   :  { %v352_v41 = vadd.f32 %v349_v40, %v338_v39 }
  0xda   :  { %v354_v42 = vmax.f32 %v352_v41, 0.0 }
  0xdc   :  { %356 = vst [vmem:[%s903_s3 + $0x8] sm:$0xff] %v354_v42 }

// kernel: lenet_forward.5
= control target key start
LH: loop header
LB: loop body
LE: loop exit
PB: predicated region body
PF: predicated region fallthrough
CT: control target
= control target key end

     0   :  { %s620_s1 = inlined_call_operand.vmem [shape: f32[512,128], index: 1, kind: input, shape index: {}]   ;;  %s621_s2 = inlined_call_operand.vmem [shape: f32[1,128], index: 2, kind: input, shape index: {}]   ;;  %s622_s0 = inlined_call_operand.vmem [shape: f32[8,512], index: 0, kind: input, shape index: {}]   ;;  %s623_s3 = inlined_call_operand.vmem [shape: f32[128,128], index: 3, kind: input, shape index: {}]   ;;  %s624_s4 = inlined_call_operand.vmem [shape: f32[1,128], index: 4, kind: input, shape index: {}]   ;;  %s625_s5 = inlined_call_operand.vmem [shape: f32[128,128], index: 5, kind: input, shape index: {}]   ;;  %s626_s6 = inlined_call_operand.vmem [shape: f32[1,128], index: 6, kind: input, shape index: {}]   ;;  %s627_s7 = inlined_call_operand.vmem [shape: f32[8,128], index: 7, kind: output, shape index: {}]  }
   0x1   :  { %v77_v0 = vld [vmem:[%s620_s1 + $0x178] sm:$0xff]  ;;  %v76_v2 = vld [vmem:[%s620_s1 + $0x170] sm:$0xff]  ;;  %v75_v6 = vld [vmem:[%s620_s1 + $0x168] sm:$0xff] }
   0x2   :  { %v45_v1 = vld [vmem:[%s620_s1 + $0x78] sm:$0xff]  ;;  %138 = vmatpush.msra.mxu2 %v77_v0  ;;  %v44_v4 = vld [vmem:[%s620_s1 + $0x70] sm:$0xff]  ;;  %v43_v8 = vld [vmem:[%s620_s1 + $0x68] sm:$0xff] }
   0x3   :  { %98 = vmatpush.msra.mxu0 %v45_v1  ;;  %v93_v3 = vld [vmem:[%s620_s1 + $0x1f8] sm:$0xff]  ;;  %v92_v7 = vld [vmem:[%s620_s1 + $0x1f0] sm:$0xff]  ;;  %v91_v10 = vld [vmem:[%s620_s1 + $0x1e8] sm:$0xff] }
   0x4   :  { %v61_v5 = vld [vmem:[%s620_s1 + $0xf8] sm:$0xff]  ;;  %158 = vmatpush.msra.mxu3 %v93_v3  ;;  %139 = vmatpush.msra.mxu2 %v76_v2  ;;  %v60_v9 = vld [vmem:[%s620_s1 + $0xf0] sm:$0xff]  ;;  %v74_v11 = vld [vmem:[%s620_s1 + $0x160] sm:$0xff] }
   0x5   :  { %118 = vmatpush.msra.mxu1 %v61_v5  ;;  %99 = vmatpush.msra.mxu0 %v44_v4  ;;  %v42_v12 = vld [vmem:[%s620_s1 + $0x60] sm:$0xff]  ;;  %v59_v13 = vld [vmem:[%s620_s1 + $0xe8] sm:$0xff]  ;;  %v73_v16 = vld [vmem:[%s620_s1 + $0x158] sm:$0xff] }
   0x6   :  { %159 = vmatpush.msra.mxu3 %v92_v7  ;;  %140 = vmatpush.msra.mxu2 %v75_v6  ;;  %v90_v14 = vld [vmem:[%s620_s1 + $0x1e0] sm:$0xff]  ;;  %v41_v17 = vld [vmem:[%s620_s1 + $0x58] sm:$0xff]  ;;  %v72_v20 = vld [vmem:[%s620_s1 + $0x150] sm:$0xff] }
   0x7   :  { %119 = vmatpush.msra.mxu1 %v60_v9  ;;  %100 = vmatpush.msra.mxu0 %v43_v8  ;;  %v58_v15 = vld [vmem:[%s620_s1 + $0xe0] sm:$0xff]  ;;  %v89_v18 = vld [vmem:[%s620_s1 + $0x1d8] sm:$0xff]  ;;  %v40_v21 = vld [vmem:[%s620_s1 + $0x50] sm:$0xff] }
   0x8   :  { %160 = vmatpush.msra.mxu3 %v91_v10  ;;  %141 = vmatpush.msra.mxu2 %v74_v11  ;;  %v57_v19 = vld [vmem:[%s620_s1 + $0xd8] sm:$0xff]  ;;  %v88_v22 = vld [vmem:[%s620_s1 + $0x1d0] sm:$0xff]  ;;  %v71_v24 = vld [vmem:[%s620_s1 + $0x148] sm:$0xff] }
   0x9   :  { %120 = vmatpush.msra.mxu1 %v59_v13  ;;  %101 = vmatpush.msra.mxu0 %v42_v12  ;;  %v56_v23 = vld [vmem:[%s620_s1 + $0xd0] sm:$0xff]  ;;  %v39_v25 = vld [vmem:[%s620_s1 + $0x48] sm:$0xff]  ;;  %v70_v28 = vld [vmem:[%s620_s1 + $0x140] sm:$0xff] }
   0xa   :  { %161 = vmatpush.msra.mxu3 %v90_v14  ;;  %142 = vmatpush.msra.mxu2 %v73_v16  ;;  %v87_v26 = vld [vmem:[%s620_s1 + $0x1c8] sm:$0xff]  ;;  %v38_v29 = vld [vmem:[%s620_s1 + $0x40] sm:$0xff]  ;;  %v69_v32 = vld [vmem:[%s620_s1 + $0x138] sm:$0xff] }
   0xb   :  { %121 = vmatpush.msra.mxu1 %v58_v15  ;;  %102 = vmatpush.msra.mxu0 %v41_v17  ;;  %v55_v27 = vld [vmem:[%s620_s1 + $0xc8] sm:$0xff]  ;;  %v86_v30 = vld [vmem:[%s620_s1 + $0x1c0] sm:$0xff]  ;;  %v37_v33 = vld [vmem:[%s620_s1 + $0x38] sm:$0xff] }
   0xc   :  { %162 = vmatpush.msra.mxu3 %v89_v18  ;;  %143 = vmatpush.msra.mxu2 %v72_v20  ;;  %v54_v31 = vld [vmem:[%s620_s1 + $0xc0] sm:$0xff]  ;;  %v85_v34 = vld [vmem:[%s620_s1 + $0x1b8] sm:$0xff]  ;;  %v68_v36 = vld [vmem:[%s620_s1 + $0x130] sm:$0xff] }
   0xd   :  { %122 = vmatpush.msra.mxu1 %v57_v19  ;;  %103 = vmatpush.msra.mxu0 %v40_v21  ;;  %v53_v35 = vld [vmem:[%s620_s1 + $0xb8] sm:$0xff]  ;;  %v36_v37 = vld [vmem:[%s620_s1 + $0x30] sm:$0xff]  ;;  %v67_v40 = vld [vmem:[%s620_s1 + $0x128] sm:$0xff] }
   0xe   :  { %163 = vmatpush.msra.mxu3 %v88_v22  ;;  %144 = vmatpush.msra.mxu2 %v71_v24  ;;  %v84_v38 = vld [vmem:[%s620_s1 + $0x1b0] sm:$0xff]  ;;  %v35_v41 = vld [vmem:[%s620_s1 + $0x28] sm:$0xff]  ;;  %v66_v44 = vld [vmem:[%s620_s1 + $0x120] sm:$0xff] }
   0xf   :  { %123 = vmatpush.msra.mxu1 %v56_v23  ;;  %104 = vmatpush.msra.mxu0 %v39_v25  ;;  %v52_v39 = vld [vmem:[%s620_s1 + $0xb0] sm:$0xff]  ;;  %v83_v42 = vld [vmem:[%s620_s1 + $0x1a8] sm:$0xff]  ;;  %v34_v45 = vld [vmem:[%s620_s1 + $0x20] sm:$0xff] }
  0x10   :  { %164 = vmatpush.msra.mxu3 %v87_v26  ;;  %145 = vmatpush.msra.mxu2 %v70_v28  ;;  %v51_v43 = vld [vmem:[%s620_s1 + $0xa8] sm:$0xff]  ;;  %v82_v46 = vld [vmem:[%s620_s1 + $0x1a0] sm:$0xff]  ;;  %v65_v48 = vld [vmem:[%s620_s1 + $0x118] sm:$0xff] }
  0x11   :  { %124 = vmatpush.msra.mxu1 %v55_v27  ;;  %105 = vmatpush.msra.mxu0 %v38_v29  ;;  %v50_v47 = vld [vmem:[%s620_s1 + $0xa0] sm:$0xff]  ;;  %v33_v49 = vld [vmem:[%s620_s1 + $0x18] sm:$0xff]  ;;  %v64_v52 = vld [vmem:[%s620_s1 + $0x110] sm:$0xff] }
  0x12   :  { %165 = vmatpush.msra.mxu3 %v86_v30  ;;  %146 = vmatpush.msra.mxu2 %v69_v32  ;;  %v81_v50 = vld [vmem:[%s620_s1 + $0x198] sm:$0xff]  ;;  %v32_v53 = vld [vmem:[%s620_s1 + $0x10] sm:$0xff]  ;;  %v63_v56 = vld [vmem:[%s620_s1 + $0x108] sm:$0xff] }
  0x13   :  { %125 = vmatpush.msra.mxu1 %v54_v31  ;;  %106 = vmatpush.msra.mxu0 %v37_v33  ;;  %v49_v51 = vld [vmem:[%s620_s1 + $0x98] sm:$0xff]  ;;  %v80_v54 = vld [vmem:[%s620_s1 + $0x190] sm:$0xff]  ;;  %v31_v57 = vld [vmem:[%s620_s1 + $0x8] sm:$0xff] }
  0x14   :  { %166 = vmatpush.msra.mxu3 %v85_v34  ;;  %147 = vmatpush.msra.mxu2 %v68_v36  ;;  %v48_v55 = vld [vmem:[%s620_s1 + $0x90] sm:$0xff]  ;;  %v79_v58 = vld [vmem:[%s620_s1 + $0x188] sm:$0xff]  ;;  %v62_v60 = vld [vmem:[%s620_s1 + $0x100] sm:$0xff] }
  0x15   :  { %126 = vmatpush.msra.mxu1 %v53_v35  ;;  %107 = vmatpush.msra.mxu0 %v36_v37  ;;  %v47_v59 = vld [vmem:[%s620_s1 + $0x88] sm:$0xff]  ;;  %v30_v61 = vld [vmem:[%s620_s1] sm:$0xff]  ;;  %v28_v62 = vld [vmem:[%s622_s0 + $0x10] sm:$0xff] }
  0x16   :  { %167 = vmatpush.msra.mxu3 %v84_v38  ;;  %148 = vmatpush.msra.mxu2 %v67_v40  ;;  %v78_v63 = vld [vmem:[%s620_s1 + $0x180] sm:$0xff]  ;;  %v29_v1 = vld [vmem:[%s622_s0 + $0x18] sm:$0xff]  ;;  %v27_v4 = vld [vmem:[%s622_s0 + $0x8] sm:$0xff] }
  0x17   :  { %127 = vmatpush.msra.mxu1 %v52_v39  ;;  %108 = vmatpush.msra.mxu0 %v35_v41  ;;  %v26_v0 = vld [vmem:[%s622_s0] sm:$0xff]  ;;  %v194_v3 = vld [vmem:[%s623_s3 + $0x78] sm:$0xff]  ;;  %v193_v5 = vld [vmem:[%s623_s3 + $0x70] sm:$0xff] }
  0x18   :  { %168 = vmatpush.msra.mxu3 %v83_v42  ;;  %149 = vmatpush.msra.mxu2 %v66_v44  ;;  %v46_v2 = vld [vmem:[%s620_s1 + $0x80] sm:$0xff]  ;;  %v192_v6 = vld [vmem:[%s623_s3 + $0x68] sm:$0xff]  ;;  %v190_v8 = vld [vmem:[%s623_s3 + $0x58] sm:$0xff] }
  0x19   :  { %128 = vmatpush.msra.mxu1 %v51_v43  ;;  %109 = vmatpush.msra.mxu0 %v34_v45  ;;  %v191_v7 = vld [vmem:[%s623_s3 + $0x60] sm:$0xff]  ;;  %v189_v9 = vld [vmem:[%s623_s3 + $0x50] sm:$0xff]  ;;  %v188_v10 = vld [vmem:[%s623_s3 + $0x48] sm:$0xff] }
  0x1a   :  { %169 = vmatpush.msra.mxu3 %v82_v46  ;;  %150 = vmatpush.msra.mxu2 %v65_v48  ;;  %v187_v11 = vld [vmem:[%s623_s3 + $0x40] sm:$0xff]  ;;  %v186_v12 = vld [vmem:[%s623_s3 + $0x38] sm:$0xff]  ;;  %v185_v13 = vld [vmem:[%s623_s3 + $0x30] sm:$0xff] }
  0x1b   :  { %129 = vmatpush.msra.mxu1 %v50_v47  ;;  %110 = vmatpush.msra.mxu0 %v33_v49  ;;  %v184_v14 = vld [vmem:[%s623_s3 + $0x28] sm:$0xff]  ;;  %v183_v15 = vld [vmem:[%s623_s3 + $0x20] sm:$0xff]  ;;  %v182_v16 = vld [vmem:[%s623_s3 + $0x18] sm:$0xff] }
  0x1c   :  { %170 = vmatpush.msra.mxu3 %v81_v50  ;;  %151 = vmatpush.msra.mxu2 %v64_v52  ;;  %v181_v17 = vld [vmem:[%s623_s3 + $0x10] sm:$0xff]  ;;  %v180_v18 = vld [vmem:[%s623_s3 + $0x8] sm:$0xff]  ;;  %v179_v19 = vld [vmem:[%s623_s3] sm:$0xff] }
  0x1d   :  { %130 = vmatpush.msra.mxu1 %v49_v51  ;;  %111 = vmatpush.msra.mxu0 %v32_v53  ;;  %v235_v20 = vld [vmem:[%s625_s5 + $0x78] sm:$0xff]  ;;  %v234_v21 = vld [vmem:[%s625_s5 + $0x70] sm:$0xff]  ;;  %v233_v22 = vld [vmem:[%s625_s5 + $0x68] sm:$0xff] }
  0x1e   :  { %171 = vmatpush.msra.mxu3 %v80_v54  ;;  %152 = vmatpush.msra.mxu2 %v63_v56  ;;  %v232_v23 = vld [vmem:[%s625_s5 + $0x60] sm:$0xff]  ;;  %v231_v24 = vld [vmem:[%s625_s5 + $0x58] sm:$0xff]  ;;  %v230_v25 = vld [vmem:[%s625_s5 + $0x50] sm:$0xff] }
  0x1f   :  { %131 = vmatpush.msra.mxu1 %v48_v55  ;;  %112 = vmatpush.msra.mxu0 %v31_v57  ;;  %v229_v26 = vld [vmem:[%s625_s5 + $0x48] sm:$0xff]  ;;  %v228_v27 = vld [vmem:[%s625_s5 + $0x40] sm:$0xff]  ;;  %v227_v28 = vld [vmem:[%s625_s5 + $0x38] sm:$0xff] }
  0x20   :  { %172 = vmatpush.msra.mxu3 %v79_v58  ;;  %153 = vmatpush.msra.mxu2 %v62_v60  ;;  %v226_v29 = vld [vmem:[%s625_s5 + $0x30] sm:$0xff]  ;;  %v265_v30 = vld [vmem:[%s621_s2] ss:$0 sm:$0xff]  ;;  %v225_v31 = vld [vmem:[%s625_s5 + $0x28] sm:$0xff] }
  0x21   :  { %132 = vmatpush.msra.mxu1 %v47_v59  ;;  %113 = vmatpush.msra.mxu0 %v30_v61  ;;  %v224_v33 = vld [vmem:[%s625_s5 + $0x20] sm:$0xff]  ;;  %v223_v36 = vld [vmem:[%s625_s5 + $0x18] sm:$0xff]  ;;  %v222_v43 = vld [vmem:[%s625_s5 + $0x10] sm:$0xff] }
  0x22   :  { %154 = vmatmul.f32.vlgmr.msra.gmra.mxu2 %v28_v62  ;;  %173 = vmatpush.msra.mxu3 %v78_v63  ;;  %v221_v44 = vld [vmem:[%s625_s5 + $0x8] sm:$0xff]  ;;  %v220_v45 = vld [vmem:[%s625_s5] sm:$0xff] }
  0x23   :  { %114 = vmatmul.f32.vlgmr.msra.gmra.mxu0 %v26_v0  ;;  %174 = vmatmul.f32.vlgmr.msra.gmra.mxu3 %v29_v1  ;;  %v266_v46 = vld [vmem:[%s624_s4] ss:$0 sm:$0xff] }
  0x24   :  { %133 = vmatpush.msra.mxu1 %v46_v2  ;;  %199 = vmatpush.msrb.mxu0 %v194_v3  ;;  %v267_v50 = vld [vmem:[%s626_s6] ss:$0 sm:$0xff] }
  0x25   :  { %134 = vmatmul.f32.vlgmr.msra.gmra.mxu1 %v27_v4 }
  0x26   :  { %200 = vmatpush.msrb.mxu0 %v193_v5  ;;  %240 = vmatpush.msrb.mxu1 %v235_v20 }
  0x28   :  { %201 = vmatpush.msrb.mxu0 %v192_v6  ;;  %241 = vmatpush.msrb.mxu1 %v234_v21 }
  0x2a   :  { %202 = vmatpush.msrb.mxu0 %v191_v7  ;;  %242 = vmatpush.msrb.mxu1 %v233_v22 }
  0x2c   :  { %203 = vmatpush.msrb.mxu0 %v190_v8  ;;  %243 = vmatpush.msrb.mxu1 %v232_v23 }
  0x2e   :  { %204 = vmatpush.msrb.mxu0 %v189_v9  ;;  %244 = vmatpush.msrb.mxu1 %v231_v24 }
  0x30   :  { %205 = vmatpush.msrb.mxu0 %v188_v10  ;;  %245 = vmatpush.msrb.mxu1 %v230_v25 }
  0x32   :  { %206 = vmatpush.msrb.mxu0 %v187_v11  ;;  %246 = vmatpush.msrb.mxu1 %v229_v26 }
  0x34   :  { %207 = vmatpush.msrb.mxu0 %v186_v12  ;;  %247 = vmatpush.msrb.mxu1 %v228_v27 }
  0x36   :  { %208 = vmatpush.msrb.mxu0 %v185_v13  ;;  %248 = vmatpush.msrb.mxu1 %v227_v28 }
  0x38   :  { %209 = vmatpush.msrb.mxu0 %v184_v14  ;;  %249 = vmatpush.msrb.mxu1 %v226_v29 }
  0x3a   :  { %210 = vmatpush.msrb.mxu0 %v183_v15  ;;  %250 = vmatpush.msrb.mxu1 %v225_v31 }
  0x3c   :  { %211 = vmatpush.msrb.mxu0 %v182_v16  ;;  %251 = vmatpush.msrb.mxu1 %v224_v33 }
  0x3e   :  { %212 = vmatpush.msrb.mxu0 %v181_v17  ;;  %252 = vmatpush.msrb.mxu1 %v223_v36 }
  0x40   :  { %213 = vmatpush.msrb.mxu0 %v180_v18  ;;  %253 = vmatpush.msrb.mxu1 %v222_v43 }
  0x42   :  { %214 = vmatpush.msrb.mxu0 %v179_v19  ;;  %254 = vmatpush.msrb.mxu1 %v221_v44 }
  0x44   :  { %255 = vmatpush.msrb.mxu1 %v220_v45 }
  0xa0   :  { %v115_v32 = vpop.f32.mrf.mxu0 }
  0xa1   :  { %v116_v34 = vadd.f32 %v265_v30, %v115_v32 }
  0xa2   :  { %v135_v35 = vpop.f32.mrf.mxu1 }
  0xa3   :  { %v136_v37 = vadd.f32 %v135_v35, %v116_v34 }
  0xa5   :  { %v155_v38 = vpop.f32.mrf.mxu2 }
  0xa6   :  { %v156_v39 = vadd.f32 %v155_v38, %v136_v37  ;;  %v175_v40 = vpop.f32.mrf.mxu3 }
  0xa8   :  { %v176_v41 = vadd.f32 %v175_v40, %v156_v39 }
  0xaa   :  { %v178_v42 = vmax.f32 %v176_v41, 0.0 }
  0xac   :  { %215 = vmatmul.f32.vlgmr.msrb.gmra.mxu0 %v178_v42 }
 0x129   :  { %v216_v47 = vpop.f32.mrf.mxu0 }
 0x12a   :  { %v217_v48 = vadd.f32 %v266_v46, %v216_v47 }
 0x12c   :  { %v219_v49 = vmax.f32 %v217_v48, 0.0 }
 0x12e   :  { %256 = vmatmul.f32.vlgmr.msrb.gmra.mxu1 %v219_v49 }
 0x1ab   :  { %v257_v51 = vpop.f32.mrf.mxu1 }
 0x1ac   :  { %v258_v52 = vadd.f32 %v267_v50, %v257_v51 }
 0x1ae   :  { %260 = vst [vmem:[%s627_s7] sm:$0xff] %v258_v52 }

</bundles_post_ra>
